<compile_context>
chip_gen: v7x
topology: tpu7x:2x2x1
jax: 0.10.0
libtpu: 0.0.40
codegen_flags: <defaults>
</compile_context>

<pallas_src>
import jax
import jax.numpy as jnp
from jax import lax
from jax.experimental import pallas as pl
from jax.experimental.pallas import tpu as pltpu

_EPS = 1e-5


def _make_preres_kernel(has_projection):
    """Build the fused kernel, specialized on whether the shortcut is a 1x1 conv."""

    def kernel(*refs):
        if has_projection:
            (x_ref, g1_ref, be1_ref, p1_ref, p1t_ref, w1_ref,
             g2_ref, be2_ref, p2_ref, p2t_ref, w2_ref, cb2_ref,
             wsb_ref, bsw_ref, out_ref, pad1_ref, pad2_ref) = refs
        else:
            (x_ref, g1_ref, be1_ref, p1_ref, p1t_ref, w1_ref,
             g2_ref, be2_ref, p2_ref, p2t_ref, w2_ref, cb2_ref,
             out_ref, pad1_ref, pad2_ref) = refs
            wsb_ref = bsw_ref = None

        hn, wcin = x_ref.shape            # (H*N, W*Cin), rows ordered (H, N)
        cin = p1_ref.shape[1]
        w = wcin // cin
        hpad, n, _ = pad1_ref.shape       # (H+2, N, W*Cin)
        h = hpad - 2
        inv_m = 1.0 / float(hn * w)       # 1 / (N*H*W) samples per channel

        x = x_ref[...]                    # (H*N, W*Cin) f32

        def bn_relu(z, g_ref, b_ref, p_ref, pt_ref):
            """Training-mode BN + ReLU folded into one FMA + max per element.

            Two fused M=2 matmuls replace four serial M=1 matmuls.
            """
            s = jnp.concatenate(
                [jnp.sum(z, axis=0, keepdims=True),          # sum x
                 jnp.sum(z * z, axis=0, keepdims=True)],      # sum x^2 (one-pass)
                axis=0)                                        # (2, W*C)
            stats = jnp.dot(s, p_ref[...],
                            preferred_element_type=jnp.float32) * inv_m   # (2, C)
            mean = stats[0:1, :]
            # one-pass biased variance; see correctness note re. cancellation
            var = stats[1:2, :] - mean * mean
            scale = g_ref[...] * lax.rsqrt(var + _EPS)
            shift = b_ref[...] - mean * scale
            sw = jnp.dot(jnp.concatenate([scale, shift], axis=0), pt_ref[...],
                         preferred_element_type=jnp.float32)              # (2, W*C)
            return jnp.maximum(z * sw[0:1, :] + sw[1:2, :], 0.0)

        def conv3x3(a, pad_ref, w_ref):
            """3x3 conv as a single bf16 MXU matmul against stacked banded weights.

            pad_ref is (H+2, N, W*C) bf16: slab reads and the interior write are
            leading-dim slices (free views, no relayout).
            """
            wc = pad_ref.shape[2]
            zrow = jnp.zeros((1, n, wc), jnp.bfloat16)
            pad_ref[0:1, :, :] = zrow                     # zero only the 2 halo rows
            pad_ref[h + 1:h + 2, :, :] = zrow
            pad_ref[1:h + 1, :, :] = a.astype(jnp.bfloat16).reshape(h, n, wc)
            slabs = jnp.concatenate(
                [pad_ref[kh:kh + h, :, :].reshape(hn, wc) for kh in range(3)],
                axis=1)                                   # (H*N, 3*W*C)
            return jnp.dot(slabs, w_ref[...],
                           preferred_element_type=jnp.float32)

        a1 = bn_relu(x, g1_ref, be1_ref, p1_ref, p1t_ref)      # BN1 + ReLU
        # conv1 bias (cb1) intentionally omitted: BN2's batch mean cancels it.
        y1 = conv3x3(a1, pad1_ref, w1_ref)                     # Conv1
        a2 = bn_relu(y1, g2_ref, be2_ref, p2_ref, p2t_ref)     # BN2 + ReLU
        y2 = conv3x3(a2, pad2_ref, w2_ref) + cb2_ref[...]      # Conv2 (+ bias)

        if has_projection:                # 1x1-conv shortcut: one block-diag matmul
            sc = jnp.dot(x.astype(jnp.bfloat16), wsb_ref[...],
                         preferred_element_type=jnp.float32) + bsw_ref[...]
        else:                             # identity shortcut: no matmul at all
            sc = x

        out_ref[...] = (y2 + sc).astype(out_ref.dtype)

    return kernel


def preres_unit_pallas(x_nchw, params, stride=1):
    """Forward pass of PreResUnit. Input/output are NCHW (PyTorch convention)."""
    assert stride == 1, "TODO(synk): strided conv path not implemented in kernel"
    N, Cin, H, W = x_nchw.shape
    Cout = params["w2"].shape[-1]
    f32 = jnp.float32
    WCin, WCout = W * Cin, W * Cout
    HN = H * N

    # glue: NCHW -> lane-dense (H*N, W*Cin), rows ordered (H, N) so each kh conv
    # slab inside the kernel is a contiguous leading-dim slice.
    x2d = jnp.transpose(x_nchw, (2, 0, 3, 1)).reshape(HN, WCin).astype(f32)

    def banded_stacked(w_hwio, ci, co):
        """(3,3,ci,co) HWIO -> (3*W*ci, W*co) stacked banded-Toeplitz weights.
        kw taps, input channels and the zero padding in W fold into the
        contraction dim; the 3 kh taps stack along K so each conv is ONE matmul.
        bf16 for MXU operands."""
        taps = []
        for kh in range(3):
            blk = jnp.zeros((W * ci, W * co), f32)
            for kw in range(3):
                blk = blk + jnp.kron(jnp.eye(W, W, k=1 - kw, dtype=f32),
                                     w_hwio[kh, kw].astype(f32))
            taps.append(blk)
        return jnp.concatenate(taps, axis=0).astype(jnp.bfloat16)

    row = lambda v: jnp.asarray(v, f32).reshape(1, -1)
    w1stk = banded_stacked(params["w1"], Cin, Cout)
    w2stk = banded_stacked(params["w2"], Cout, Cout)
    # per-channel reduce (P) / broadcast (P.T) matrices for the (., W*C) layout
    p1 = jnp.kron(jnp.ones((W, 1), f32), jnp.eye(Cin, dtype=f32))    # (W*Cin, Cin)
    p2 = jnp.kron(jnp.ones((W, 1), f32), jnp.eye(Cout, dtype=f32))   # (W*Cout, Cout)
    cb2w = jnp.tile(row(params["cb2"]), (1, W))                      # (1, W*Cout)
    # NOTE: cb1 is NOT passed — it cancels exactly through training-mode BN2.

    args = [x2d, row(params["g1"]), row(params["b1"]), p1, p1.T, w1stk,
            row(params["g2"]), row(params["b2"]), p2, p2.T, w2stk, cb2w]

    has_projection = params["ws"] is not None
    if has_projection:
        wsb = jnp.kron(jnp.eye(W, dtype=f32),
                       params["ws"].reshape(Cin, Cout).astype(f32)).astype(jnp.bfloat16)
        args += [wsb, jnp.tile(row(params["bs"]), (1, W))]
    else:
        assert Cin == Cout  # identity shortcut only valid when shapes match

    vmem = pl.BlockSpec(memory_space=pltpu.MemorySpace.VMEM)
    out2d = pl.pallas_call(
        _make_preres_kernel(has_projection),
        out_shape=jax.ShapeDtypeStruct((HN, WCout), f32),
        in_specs=[vmem] * len(args),
        out_specs=vmem,
        # bf16 padded scratches, exact lane widths, (H+2, N, W*C) layout
        scratch_shapes=[pltpu.VMEM((H + 2, N, WCin), jnp.bfloat16),
                        pltpu.VMEM((H + 2, N, WCout), jnp.bfloat16)],
    )(*args)

    # (H*N, W*Cout) -> (H, N, W, Cout) -> NCHW
    return jnp.transpose(out2d.reshape(H, N, W, Cout), (1, 3, 0, 2))


# jit the whole wrapper so the kron/tile/transpose glue fuses and does not
# re-dispatch as dozens of tiny XLA ops per call.
preres_unit_pallas_jit = jax.jit(preres_unit_pallas, static_argnames=("stride",))


# ------------------------- pure-JAX reference ------------------------------
def preres_unit_ref(x_nchw, params):
    x = jnp.transpose(x_nchw, (0, 2, 3, 1)).astype(jnp.float32)

    def bn(z, g, b):
        m = z.mean(axis=(0, 1, 2), keepdims=True)
        v = ((z - m) ** 2).mean(axis=(0, 1, 2), keepdims=True)
        return g * (z - m) * lax.rsqrt(v + _EPS) + b

    def conv3x3(z, w, b):
        y = lax.conv_general_dilated(
            z, w, window_strides=(1, 1), padding=((1, 1), (1, 1)),
            dimension_numbers=("NHWC", "HWIO", "NHWC"),
            precision=lax.Precision.HIGHEST)
        return y + b

    a1 = jax.nn.relu(bn(x, params["g1"], params["b1"]))
    h = conv3x3(a1, params["w1"], params["cb1"])   # reference KEEPS cb1
    a2 = jax.nn.relu(bn(h, params["g2"], params["b2"]))
    y = conv3x3(a2, params["w2"], params["cb2"])

    if params["ws"] is None:
        sc = x
    else:
        sc = jnp.einsum("nhwc,cd->nhwd", x,
                        params["ws"].reshape(x.shape[-1], -1),
                        precision=lax.Precision.HIGHEST) + params["bs"]
    return jnp.transpose(y + sc, (0, 3, 1, 2))


# ------------------------------- main ---------------------------------------
if __name__ == "__main__":
    def make_params(key, Cin, Cout, stride):
        ks = jax.random.split(key, 10)
        p = {
            "g1": 1.0 + 0.1 * jax.random.normal(ks[0], (Cin,), jnp.float32),
            "b1": 0.1 * jax.random.normal(ks[1], (Cin,), jnp.float32),
            "w1": 0.1 * jax.random.normal(ks[2], (3, 3, Cin, Cout), jnp.float32),
            "cb1": 0.1 * jax.random.normal(ks[3], (Cout,), jnp.float32),
            "g2": 1.0 + 0.1 * jax.random.normal(ks[4], (Cout,), jnp.float32),
            "b2": 0.1 * jax.random.normal(ks[5], (Cout,), jnp.float32),
            "w2": 0.1 * jax.random.normal(ks[6], (3, 3, Cout, Cout), jnp.float32),
            "cb2": 0.1 * jax.random.normal(ks[7], (Cout,), jnp.float32),
        }
        if stride != 1 or Cin != Cout:   # 1x1-conv shortcut
            p["ws"] = 0.1 * jax.random.normal(ks[8], (Cin, Cout), jnp.float32)
            p["bs"] = 0.1 * jax.random.normal(ks[9], (Cout,), jnp.float32)
        else:                            # identity shortcut
            p["ws"] = None
            p["bs"] = None
        return p

    key = jax.random.PRNGKey(0)
    k_pa, k_pb, k_xa, k_xb = jax.random.split(key, 4)

    # bf16 MXU operands (f32 accumulation) -> tolerance vs the pure-f32
    # reference is looser than an all-f32 kernel; real bugs are >> 2e-2.
    ATOL = RTOL = 2e-2

    # Config A: projection shortcut (in_channels != out_channels).
    N, Cin, H, W, Cout = 2, 4, 16, 16, 8
    params_a = make_params(k_pa, Cin, Cout, stride=1)
    x_a = jax.random.normal(k_xa, (N, Cin, H, W), jnp.float32)   # NCHW like PyTorch
    y_a = jax.block_until_ready(preres_unit_pallas_jit(x_a, params_a, stride=1))
    y_a_ref = preres_unit_ref(x_a, params_a)
    assert y_a.shape == (N, Cout, H, W), y_a.shape
    assert jnp.allclose(y_a, y_a_ref, atol=ATOL, rtol=RTOL), \
        float(jnp.max(jnp.abs(y_a - y_a_ref)))

    # Config B: identity shortcut (in_channels == out_channels) — exercises the
    # specialized no-matmul shortcut path.
    Ceq = 8
    params_b = make_params(k_pb, Ceq, Ceq, stride=1)
    x_b = jax.random.normal(k_xb, (N, Ceq, H, W), jnp.float32)
    y_b = jax.block_until_ready(preres_unit_pallas_jit(x_b, params_b, stride=1))
    y_b_ref = preres_unit_ref(x_b, params_b)
    assert y_b.shape == (N, Ceq, H, W), y_b.shape
    assert jnp.allclose(y_b, y_b_ref, atol=ATOL, rtol=RTOL), \
        float(jnp.max(jnp.abs(y_b - y_b_ref)))

    print("KERNEL_OK")
</pallas_src>

<mosaic_0001>
module attributes {stable_mosaic.version = 11 : i64} {
  func.func @kernel(%arg0: memref<32x64xf32, #tpu.memory_space<vmem>>, %arg1: memref<1x4xf32, #tpu.memory_space<vmem>>, %arg2: memref<1x4xf32, #tpu.memory_space<vmem>>, %arg3: memref<64x4xf32, #tpu.memory_space<vmem>>, %arg4: memref<4x64xf32, #tpu.memory_space<vmem>>, %arg5: memref<192x128xbf16, #tpu.memory_space<vmem>>, %arg6: memref<1x8xf32, #tpu.memory_space<vmem>>, %arg7: memref<1x8xf32, #tpu.memory_space<vmem>>, %arg8: memref<128x8xf32, #tpu.memory_space<vmem>>, %arg9: memref<8x128xf32, #tpu.memory_space<vmem>>, %arg10: memref<384x128xbf16, #tpu.memory_space<vmem>>, %arg11: memref<1x128xf32, #tpu.memory_space<vmem>>, %arg12: memref<64x128xbf16, #tpu.memory_space<vmem>>, %arg13: memref<1x128xf32, #tpu.memory_space<vmem>>, %arg14: memref<32x128xf32, #tpu.memory_space<vmem>>, %arg15: memref<18x2x64xbf16, #tpu.memory_space<vmem>>, %arg16: memref<18x2x128xbf16, #tpu.memory_space<vmem>>) attributes {dimension_semantics = [], scalar_prefetch = 0 : i64, scratch_operands = 2 : i64, tpu.core_type = #tpu.core_type<tc>} {
    %c0 = arith.constant 0 : index
    %c0_0 = arith.constant 0 : index
    %0 = vector.load %arg0[%c0, %c0_0] : memref<32x64xf32, #tpu.memory_space<vmem>>, vector<32x64xf32>
    %cst = arith.constant dense<0.000000e+00> : vector<64xf32>
    %1 = vector.multi_reduction <add>, %0, %cst [0] : vector<32x64xf32> to vector<64xf32>
    %2 = vector.shape_cast %1 : vector<64xf32> to vector<1x64xf32>
    %3 = arith.mulf %0, %0 : vector<32x64xf32>
    %cst_1 = arith.constant dense<0.000000e+00> : vector<64xf32>
    %4 = vector.multi_reduction <add>, %3, %cst_1 [0] : vector<32x64xf32> to vector<64xf32>
    %5 = vector.shape_cast %4 : vector<64xf32> to vector<1x64xf32>
    %6 = tpu.concatenate %2, %5 in 0 : vector<1x64xf32>, vector<1x64xf32> -> vector<2x64xf32>
    %c0_2 = arith.constant 0 : index
    %c0_3 = arith.constant 0 : index
    %7 = vector.load %arg3[%c0_2, %c0_3] : memref<64x4xf32, #tpu.memory_space<vmem>>, vector<64x4xf32>
    %cst_4 = arith.constant dense<0.000000e+00> : vector<2x4xf32>
    %8 = tpu.matmul %6, %7, %cst_4 {dimension_numbers = #tpu.dot_dimension_numbers<[1], [0], [0], [1], [0, 0, 1, 1], [], []>} : vector<2x64xf32>, vector<64x4xf32>, vector<2x4xf32> -> vector<2x4xf32>
    %cst_5 = arith.constant 0.001953125 : f32
    %9 = vector.broadcast %cst_5 : f32 to vector<2x4xf32>
    %10 = arith.mulf %8, %9 : vector<2x4xf32>
    %11 = vector.extract_strided_slice %10 {offsets = [0, 0], sizes = [1, 4], strides = [1, 1]} : vector<2x4xf32> to vector<1x4xf32>
    %12 = vector.extract_strided_slice %10 {offsets = [1, 0], sizes = [1, 4], strides = [1, 1]} : vector<2x4xf32> to vector<1x4xf32>
    %13 = arith.mulf %11, %11 : vector<1x4xf32>
    %14 = arith.subf %12, %13 : vector<1x4xf32>
    %c0_6 = arith.constant 0 : index
    %c0_7 = arith.constant 0 : index
    %15 = vector.load %arg1[%c0_6, %c0_7] : memref<1x4xf32, #tpu.memory_space<vmem>>, vector<1x4xf32>
    %cst_8 = arith.constant 9.99999974E-6 : f32
    %16 = vector.broadcast %cst_8 : f32 to vector<1x4xf32>
    %17 = arith.addf %14, %16 : vector<1x4xf32>
    %18 = math.rsqrt %17 : vector<1x4xf32>
    %19 = arith.mulf %15, %18 : vector<1x4xf32>
    %c0_9 = arith.constant 0 : index
    %c0_10 = arith.constant 0 : index
    %20 = vector.load %arg2[%c0_9, %c0_10] : memref<1x4xf32, #tpu.memory_space<vmem>>, vector<1x4xf32>
    %21 = arith.mulf %11, %19 : vector<1x4xf32>
    %22 = arith.subf %20, %21 : vector<1x4xf32>
    %23 = tpu.concatenate %19, %22 in 0 : vector<1x4xf32>, vector<1x4xf32> -> vector<2x4xf32>
    %c0_11 = arith.constant 0 : index
    %c0_12 = arith.constant 0 : index
    %24 = vector.load %arg4[%c0_11, %c0_12] : memref<4x64xf32, #tpu.memory_space<vmem>>, vector<4x64xf32>
    %cst_13 = arith.constant dense<0.000000e+00> : vector<2x64xf32>
    %25 = tpu.matmul %23, %24, %cst_13 {dimension_numbers = #tpu.dot_dimension_numbers<[1], [0], [0], [1], [0, 0, 1, 1], [], []>} : vector<2x4xf32>, vector<4x64xf32>, vector<2x64xf32> -> vector<2x64xf32>
    %26 = vector.extract_strided_slice %25 {offsets = [0, 0], sizes = [1, 64], strides = [1, 1]} : vector<2x64xf32> to vector<1x64xf32>
    %27 = vector.broadcast %26 : vector<1x64xf32> to vector<32x64xf32>
    %28 = arith.mulf %0, %27 : vector<32x64xf32>
    %29 = vector.extract_strided_slice %25 {offsets = [1, 0], sizes = [1, 64], strides = [1, 1]} : vector<2x64xf32> to vector<1x64xf32>
    %30 = vector.broadcast %29 : vector<1x64xf32> to vector<32x64xf32>
    %31 = arith.addf %28, %30 : vector<32x64xf32>
    %cst_14 = arith.constant 0.000000e+00 : f32
    %32 = vector.broadcast %cst_14 : f32 to vector<32x64xf32>
    %33 = arith.maximumf %31, %32 : vector<32x64xf32>
    %cst_15 = arith.constant 0.000000e+00 : bf16
    %34 = vector.broadcast %cst_15 : bf16 to vector<1x2x64xbf16>
    %c0_16 = arith.constant 0 : index
    %c0_17 = arith.constant 0 : index
    %c0_18 = arith.constant 0 : index
    %35 = vector.load %arg15[%c0_16, %c0_17, %c0_18] : memref<18x2x64xbf16, #tpu.memory_space<vmem>>, vector<1x2x64xbf16>
    tpu.vector_store %arg15[%c0_16, %c0_17, %c0_18], %34 {strides = array<i32>} : memref<18x2x64xbf16, #tpu.memory_space<vmem>>, vector<1x2x64xbf16>,
    %c17 = arith.constant 17 : index
    %c0_19 = arith.constant 0 : index
    %c0_20 = arith.constant 0 : index
    %36 = vector.load %arg15[%c17, %c0_19, %c0_20] : memref<18x2x64xbf16, #tpu.memory_space<vmem>>, vector<1x2x64xbf16>
    tpu.vector_store %arg15[%c17, %c0_19, %c0_20], %34 {strides = array<i32>} : memref<18x2x64xbf16, #tpu.memory_space<vmem>>, vector<1x2x64xbf16>,
    %37 = arith.truncf %33 : vector<32x64xf32> to vector<32x64xbf16>
    %38 = vector.shape_cast %37 : vector<32x64xbf16> to vector<16x2x64xbf16>
    %c1 = arith.constant 1 : index
    %c0_21 = arith.constant 0 : index
    %c0_22 = arith.constant 0 : index
    %39 = vector.load %arg15[%c1, %c0_21, %c0_22] : memref<18x2x64xbf16, #tpu.memory_space<vmem>>, vector<16x2x64xbf16>
    tpu.vector_store %arg15[%c1, %c0_21, %c0_22], %38 {strides = array<i32>} : memref<18x2x64xbf16, #tpu.memory_space<vmem>>, vector<16x2x64xbf16>,
    %c0_23 = arith.constant 0 : index
    %c0_24 = arith.constant 0 : index
    %c0_25 = arith.constant 0 : index
    %40 = vector.load %arg15[%c0_23, %c0_24, %c0_25] : memref<18x2x64xbf16, #tpu.memory_space<vmem>>, vector<16x2x64xbf16>
    %41 = vector.shape_cast %40 : vector<16x2x64xbf16> to vector<32x64xbf16>
    %c1_26 = arith.constant 1 : index
    %c0_27 = arith.constant 0 : index
    %c0_28 = arith.constant 0 : index
    %42 = vector.load %arg15[%c1_26, %c0_27, %c0_28] : memref<18x2x64xbf16, #tpu.memory_space<vmem>>, vector<16x2x64xbf16>
    %43 = vector.shape_cast %42 : vector<16x2x64xbf16> to vector<32x64xbf16>
    %c2 = arith.constant 2 : index
    %c0_29 = arith.constant 0 : index
    %c0_30 = arith.constant 0 : index
    %44 = vector.load %arg15[%c2, %c0_29, %c0_30] : memref<18x2x64xbf16, #tpu.memory_space<vmem>>, vector<16x2x64xbf16>
    %45 = vector.shape_cast %44 : vector<16x2x64xbf16> to vector<32x64xbf16>
    %46 = tpu.concatenate %41, %43, %45 in 1 : vector<32x64xbf16>, vector<32x64xbf16>, vector<32x64xbf16> -> vector<32x192xbf16>
    %c0_31 = arith.constant 0 : index
    %c0_32 = arith.constant 0 : index
    %47 = vector.load %arg5[%c0_31, %c0_32] : memref<192x128xbf16, #tpu.memory_space<vmem>>, vector<192x128xbf16>
    %cst_33 = arith.constant dense<0.000000e+00> : vector<32x128xf32>
    %48 = tpu.matmul %46, %47, %cst_33 {dimension_numbers = #tpu.dot_dimension_numbers<[1], [0], [0], [1], [0, 0, 1, 1], [], []>} : vector<32x192xbf16>, vector<192x128xbf16>, vector<32x128xf32> -> vector<32x128xf32>
    %cst_34 = arith.constant dense<0.000000e+00> : vector<128xf32>
    %49 = vector.multi_reduction <add>, %48, %cst_34 [0] : vector<32x128xf32> to vector<128xf32>
    %50 = vector.shape_cast %49 : vector<128xf32> to vector<1x128xf32>
    %51 = arith.mulf %48, %48 : vector<32x128xf32>
    %cst_35 = arith.constant dense<0.000000e+00> : vector<128xf32>
    %52 = vector.multi_reduction <add>, %51, %cst_35 [0] : vector<32x128xf32> to vector<128xf32>
    %53 = vector.shape_cast %52 : vector<128xf32> to vector<1x128xf32>
    %54 = tpu.concatenate %50, %53 in 0 : vector<1x128xf32>, vector<1x128xf32> -> vector<2x128xf32>
    %c0_36 = arith.constant 0 : index
    %c0_37 = arith.constant 0 : index
    %55 = vector.load %arg8[%c0_36, %c0_37] : memref<128x8xf32, #tpu.memory_space<vmem>>, vector<128x8xf32>
    %cst_38 = arith.constant dense<0.000000e+00> : vector<2x8xf32>
    %56 = tpu.matmul %54, %55, %cst_38 {dimension_numbers = #tpu.dot_dimension_numbers<[1], [0], [0], [1], [0, 0, 1, 1], [], []>} : vector<2x128xf32>, vector<128x8xf32>, vector<2x8xf32> -> vector<2x8xf32>
    %cst_39 = arith.constant 0.001953125 : f32
    %57 = vector.broadcast %cst_39 : f32 to vector<2x8xf32>
    %58 = arith.mulf %56, %57 : vector<2x8xf32>
    %59 = vector.extract_strided_slice %58 {offsets = [0, 0], sizes = [1, 8], strides = [1, 1]} : vector<2x8xf32> to vector<1x8xf32>
    %60 = vector.extract_strided_slice %58 {offsets = [1, 0], sizes = [1, 8], strides = [1, 1]} : vector<2x8xf32> to vector<1x8xf32>
    %61 = arith.mulf %59, %59 : vector<1x8xf32>
    %62 = arith.subf %60, %61 : vector<1x8xf32>
    %c0_40 = arith.constant 0 : index
    %c0_41 = arith.constant 0 : index
    %63 = vector.load %arg6[%c0_40, %c0_41] : memref<1x8xf32, #tpu.memory_space<vmem>>, vector<1x8xf32>
    %cst_42 = arith.constant 9.99999974E-6 : f32
    %64 = vector.broadcast %cst_42 : f32 to vector<1x8xf32>
    %65 = arith.addf %62, %64 : vector<1x8xf32>
    %66 = math.rsqrt %65 : vector<1x8xf32>
    %67 = arith.mulf %63, %66 : vector<1x8xf32>
    %c0_43 = arith.constant 0 : index
    %c0_44 = arith.constant 0 : index
    %68 = vector.load %arg7[%c0_43, %c0_44] : memref<1x8xf32, #tpu.memory_space<vmem>>, vector<1x8xf32>
    %69 = arith.mulf %59, %67 : vector<1x8xf32>
    %70 = arith.subf %68, %69 : vector<1x8xf32>
    %71 = tpu.concatenate %67, %70 in 0 : vector<1x8xf32>, vector<1x8xf32> -> vector<2x8xf32>
    %c0_45 = arith.constant 0 : index
    %c0_46 = arith.constant 0 : index
    %72 = vector.load %arg9[%c0_45, %c0_46] : memref<8x128xf32, #tpu.memory_space<vmem>>, vector<8x128xf32>
    %cst_47 = arith.constant dense<0.000000e+00> : vector<2x128xf32>
    %73 = tpu.matmul %71, %72, %cst_47 {dimension_numbers = #tpu.dot_dimension_numbers<[1], [0], [0], [1], [0, 0, 1, 1], [], []>} : vector<2x8xf32>, vector<8x128xf32>, vector<2x128xf32> -> vector<2x128xf32>
    %74 = vector.extract_strided_slice %73 {offsets = [0, 0], sizes = [1, 128], strides = [1, 1]} : vector<2x128xf32> to vector<1x128xf32>
    %75 = vector.broadcast %74 : vector<1x128xf32> to vector<32x128xf32>
    %76 = arith.mulf %48, %75 : vector<32x128xf32>
    %77 = vector.extract_strided_slice %73 {offsets = [1, 0], sizes = [1, 128], strides = [1, 1]} : vector<2x128xf32> to vector<1x128xf32>
    %78 = vector.broadcast %77 : vector<1x128xf32> to vector<32x128xf32>
    %79 = arith.addf %76, %78 : vector<32x128xf32>
    %cst_48 = arith.constant 0.000000e+00 : f32
    %80 = vector.broadcast %cst_48 : f32 to vector<32x128xf32>
    %81 = arith.maximumf %79, %80 : vector<32x128xf32>
    %cst_49 = arith.constant 0.000000e+00 : bf16
    %82 = vector.broadcast %cst_49 : bf16 to vector<1x2x128xbf16>
    %c0_50 = arith.constant 0 : index
    %c0_51 = arith.constant 0 : index
    %c0_52 = arith.constant 0 : index
    %83 = vector.load %arg16[%c0_50, %c0_51, %c0_52] : memref<18x2x128xbf16, #tpu.memory_space<vmem>>, vector<1x2x128xbf16>
    tpu.vector_store %arg16[%c0_50, %c0_51, %c0_52], %82 {strides = array<i32>} : memref<18x2x128xbf16, #tpu.memory_space<vmem>>, vector<1x2x128xbf16>,
    %c17_53 = arith.constant 17 : index
    %c0_54 = arith.constant 0 : index
    %c0_55 = arith.constant 0 : index
    %84 = vector.load %arg16[%c17_53, %c0_54, %c0_55] : memref<18x2x128xbf16, #tpu.memory_space<vmem>>, vector<1x2x128xbf16>
    tpu.vector_store %arg16[%c17_53, %c0_54, %c0_55], %82 {strides = array<i32>} : memref<18x2x128xbf16, #tpu.memory_space<vmem>>, vector<1x2x128xbf16>,
    %85 = arith.truncf %81 : vector<32x128xf32> to vector<32x128xbf16>
    %86 = vector.shape_cast %85 : vector<32x128xbf16> to vector<16x2x128xbf16>
    %c1_56 = arith.constant 1 : index
    %c0_57 = arith.constant 0 : index
    %c0_58 = arith.constant 0 : index
    %87 = vector.load %arg16[%c1_56, %c0_57, %c0_58] : memref<18x2x128xbf16, #tpu.memory_space<vmem>>, vector<16x2x128xbf16>
    tpu.vector_store %arg16[%c1_56, %c0_57, %c0_58], %86 {strides = array<i32>} : memref<18x2x128xbf16, #tpu.memory_space<vmem>>, vector<16x2x128xbf16>,
    %c0_59 = arith.constant 0 : index
    %c0_60 = arith.constant 0 : index
    %c0_61 = arith.constant 0 : index
    %88 = vector.load %arg16[%c0_59, %c0_60, %c0_61] : memref<18x2x128xbf16, #tpu.memory_space<vmem>>, vector<16x2x128xbf16>
    %89 = vector.shape_cast %88 : vector<16x2x128xbf16> to vector<32x128xbf16>
    %c1_62 = arith.constant 1 : index
    %c0_63 = arith.constant 0 : index
    %c0_64 = arith.constant 0 : index
    %90 = vector.load %arg16[%c1_62, %c0_63, %c0_64] : memref<18x2x128xbf16, #tpu.memory_space<vmem>>, vector<16x2x128xbf16>
    %91 = vector.shape_cast %90 : vector<16x2x128xbf16> to vector<32x128xbf16>
    %c2_65 = arith.constant 2 : index
    %c0_66 = arith.constant 0 : index
    %c0_67 = arith.constant 0 : index
    %92 = vector.load %arg16[%c2_65, %c0_66, %c0_67] : memref<18x2x128xbf16, #tpu.memory_space<vmem>>, vector<16x2x128xbf16>
    %93 = vector.shape_cast %92 : vector<16x2x128xbf16> to vector<32x128xbf16>
    %94 = tpu.concatenate %89, %91, %93 in 1 : vector<32x128xbf16>, vector<32x128xbf16>, vector<32x128xbf16> -> vector<32x384xbf16>
    %c0_68 = arith.constant 0 : index
    %c0_69 = arith.constant 0 : index
    %95 = vector.load %arg10[%c0_68, %c0_69] : memref<384x128xbf16, #tpu.memory_space<vmem>>, vector<384x128xbf16>
    %cst_70 = arith.constant dense<0.000000e+00> : vector<32x128xf32>
    %96 = tpu.matmul %94, %95, %cst_70 {dimension_numbers = #tpu.dot_dimension_numbers<[1], [0], [0], [1], [0, 0, 1, 1], [], []>} : vector<32x384xbf16>, vector<384x128xbf16>, vector<32x128xf32> -> vector<32x128xf32>
    %c0_71 = arith.constant 0 : index
    %c0_72 = arith.constant 0 : index
    %97 = vector.load %arg11[%c0_71, %c0_72] : memref<1x128xf32, #tpu.memory_space<vmem>>, vector<1x128xf32>
    %98 = vector.broadcast %97 : vector<1x128xf32> to vector<32x128xf32>
    %99 = arith.addf %96, %98 : vector<32x128xf32>
    %100 = arith.truncf %0 : vector<32x64xf32> to vector<32x64xbf16>
    %c0_73 = arith.constant 0 : index
    %c0_74 = arith.constant 0 : index
    %101 = vector.load %arg12[%c0_73, %c0_74] : memref<64x128xbf16, #tpu.memory_space<vmem>>, vector<64x128xbf16>
    %cst_75 = arith.constant dense<0.000000e+00> : vector<32x128xf32>
    %102 = tpu.matmul %100, %101, %cst_75 {dimension_numbers = #tpu.dot_dimension_numbers<[1], [0], [0], [1], [0, 0, 1, 1], [], []>} : vector<32x64xbf16>, vector<64x128xbf16>, vector<32x128xf32> -> vector<32x128xf32>
    %c0_76 = arith.constant 0 : index
    %c0_77 = arith.constant 0 : index
    %103 = vector.load %arg13[%c0_76, %c0_77] : memref<1x128xf32, #tpu.memory_space<vmem>>, vector<1x128xf32>
    %104 = vector.broadcast %103 : vector<1x128xf32> to vector<32x128xf32>
    %105 = arith.addf %102, %104 : vector<32x128xf32>
    %106 = arith.addf %99, %105 : vector<32x128xf32>
    %c0_78 = arith.constant 0 : index
    %c0_79 = arith.constant 0 : index
    %107 = vector.load %arg14[%c0_78, %c0_79] : memref<32x128xf32, #tpu.memory_space<vmem>>, vector<32x128xf32>
    tpu.vector_store %arg14[%c0_78, %c0_79], %106 {strides = array<i32>} : memref<32x128xf32, #tpu.memory_space<vmem>>, vector<32x128xf32>,
    return
  }
}

</mosaic_0001>

<bundles_post_ra>
// kernel: preres_unit_pallas.1
= control target key start
LH: loop header
LB: loop body
LE: loop exit
PB: predicated region body
PF: predicated region fallthrough
CT: control target
= control target key end

     0   :  { %v2510_v0 = vmov 0.0|0.0   ;;  %vm2511_vm0 = vmmov 0   ;;  %v2512_v4 = vmov 0.0   ;;  %vm52_vm1 = vcmask 523264   ;;  %s3071_s3 = inlined_call_operand.vmem [shape: f32[64,4], index: 3, kind: input, shape index: {}]   ;;  %s3072_s0 = inlined_call_operand.vmem [shape: f32[32,64], index: 0, kind: input, shape index: {}]   ;;  %s3073_s4 = inlined_call_operand.vmem [shape: f32[4,64], index: 4, kind: input, shape index: {}]   ;;  %s3074_s1 = inlined_call_operand.vmem [shape: f32[1,4], index: 1, kind: input, shape index: {}]   ;;  %s3075_s2 = inlined_call_operand.vmem [shape: f32[1,4], index: 2, kind: input, shape index: {}]   ;;  %s3076_s5 = inlined_call_operand.vmem [shape: bf16[192,128], index: 5, kind: input, shape index: {}]   ;;  %s3077_s8 = inlined_call_operand.vmem [shape: f32[128,8], index: 8, kind: input, shape index: {}]   ;;  %s3078_s9 = inlined_call_operand.vmem [shape: f32[8,128], index: 9, kind: input, shape index: {}]   ;;  %s3079_s6 = inlined_call_operand.vmem [shape: f32[1,8], index: 6, kind: input, shape index: {}]   ;;  %s3080_s7 = inlined_call_operand.vmem [shape: f32[1,8], index: 7, kind: input, shape index: {}]   ;;  %s3081_s10 = inlined_call_operand.vmem [shape: bf16[384,128], index: 10, kind: input, shape index: {}]   ;;  %s3082_s12 = inlined_call_operand.vmem [shape: bf16[64,128], index: 12, kind: input, shape index: {}]   ;;  %s3083_s11 = inlined_call_operand.vmem [shape: f32[1,128], index: 11, kind: input, shape index: {}]   ;;  %s3084_s13 = inlined_call_operand.vmem [shape: f32[1,128], index: 13, kind: input, shape index: {}]   ;;  %s3085_s14 = inlined_call_operand.vmem [shape: f32[32,128], index: 14, kind: output, shape index: {}]  }
   0x1   :  { %2408 = vmatprep.subr.bf16.mxu0 %v2510_v0  ;;  %v85_v1 = vld [vmem:[%s3071_s3] sm:$0xff]  ;;  %v86_v2 = vld [vmem:[%s3071_s3 + $0x8] sm:$0xff]  ;;  %v87_v3 = vld [vmem:[%s3071_s3 + $0x10] sm:$0xff]  ;;  %2328 = vmatprep.mubr.msk.f32.mxu0 %vm2511_vm0, %v2512_v4  ;;  %vm83_vm2 = vcmask 1040384   ;;  %vm208_vm3 = vcmask 1043456   ;;  %v179_v59 = vlaneseq  ;;  %vm204_vm4 = vcmask 31744  }
   0x2   :  { %v2409_v5 = vpack.c.bf16 %v86_v2, %v85_v1  ;;  %v88_v6 = vld [vmem:[%s3071_s3 + $0x18] sm:$0xff]  ;;  %v2609_v7 = vld [vmem:[%s3072_s0] sm:$0xff]  ;;  %v2614_v9 = vld [vmem:[%s3072_s0 + $0x8] sm:$0xff]  ;;  %v2513_v57 = vmov 1966171168   ;;  %vm302_vm5 = vcmask 516096  }
   0x3   :  { %v2412_v8 = vpack.c.bf16 %v88_v6, %v87_v3  ;;  %v2619_v10 = vld [vmem:[%s3072_s0 + $0x10] sm:$0xff]  ;;  %v2624_v11 = vld [vmem:[%s3072_s0 + $0x18] sm:$0xff]  ;;  %v53_v12 = vsel %vm52_vm1, %v2609_v7, 0.0  ;;  %v66_v13 = vmul.f32 %v2609_v7, %v2609_v7  ;;  %v89_v14 = vld [vmem:[%s3071_s3 + $0x20] sm:$0xff]  ;;  %v54_v16 = vsel %vm52_vm1, %v2614_v9, 0.0 }
   0x4   :  { %2410 = vmatpush3.bf16.msra.mxu0 %v2409_v5  ;;  %v90_v15 = vld [vmem:[%s3071_s3 + $0x28] sm:$0xff]  ;;  %v56_v17 = vsel %vm52_vm1, %v2619_v10, 0.0  ;;  %v67_v18 = vmul.f32 %v2614_v9, %v2614_v9  ;;  %v55_v19 = vadd.f32 %v54_v16, %v53_v12  ;;  %v68_v20 = vmul.f32 %v2619_v10, %v2619_v10  ;;  %v91_v29 = vld [vmem:[%s3071_s3 + $0x30] sm:$0xff]  ;;  %v92_v30 = vld [vmem:[%s3071_s3 + $0x38] sm:$0xff] }
   0x5   :  { %2411 = vmatprep.subr.bf16.mxu0 %v2510_v0  ;;  %v69_v21 = vmul.f32 %v2624_v11, %v2624_v11  ;;  %v70_v22 = vsel %vm52_vm1, %v66_v13, 0.0  ;;  %v58_v23 = vsel %vm52_vm1, %v2624_v11, 0.0  ;;  %v2415_v25 = vpack.c.bf16 %v90_v15, %v89_v14  ;;  %v203_v49 = vld [vmem:[%s3073_s4] sm:$0xf] }
   0x6   :  { %v71_v24 = vsel %vm52_vm1, %v67_v18, 0.0  ;;  %v57_v26 = vadd.f32 %v56_v17, %v55_v19  ;;  %v73_v28 = vsel %vm52_vm1, %v68_v20, 0.0  ;;  %v2418_v34 = vpack.c.bf16 %v92_v30, %v91_v29  ;;  %v172_v3 = vld [vmem:[%s3074_s1] sm:$0x1]  ;;  %v2463_v19 = vld [vmem:[%s3076_s5 + $0x8] sm:$0xff]   ;;  %v2464_v20 = vld [vmem:[%s3076_s5 + $0x10] sm:$0xff]  }
   0x7   :  { %v72_v27 = vadd.f32 %v71_v24, %v70_v22  ;;  %v75_v31 = vsel %vm52_vm1, %v69_v21, 0.0  ;;  %v177_v58 = vunpack.c.l.s4 %v2513_v57  ;;  %v2670_v61 = vshrl.u32 %v179_v59, 7  ;;  %v2462_v18 = vld [vmem:[%s3076_s5] sm:$0xff]   ;;  %v2465_v21 = vld [vmem:[%s3076_s5 + $0x18] sm:$0xff]   ;;  %v2468_v24 = vld [vmem:[%s3076_s5 + $0x30] sm:$0xff]  }
   0x8   :  { %2413 = vmatpush3.bf16.msra.mxu0 %v2412_v8  ;;  %v59_v32 = vadd.f32 %v58_v23, %v57_v26  ;;  %v193_v8 = vld [vmem:[%s3075_s2] sm:$0x1]  ;;  %v2514_v17 = vmov 0   ;;  %v2467_v23 = vld [vmem:[%s3076_s5 + $0x28] sm:$0xff]   ;;  %v2473_v29 = vld [vmem:[%s3076_s5 + $0x58] sm:$0xff]   ;;  %vm1142_vm6 = vcmask 64512  }
   0x9   :  { %2414 = vmatprep.subr.bf16.mxu0 %v2510_v0  ;;  %v74_v33 = vadd.f32 %v73_v28, %v72_v27  ;;  %v178_v60 = vunpack.c.0.s8 %v177_v58  ;;  %v2684_v13 = vsub.s32 0, %v2670_v61  ;;  %946 = vmatprep.subr.bf16.mxu1 %v2514_v17  ;;  %303 = vst.msk [vmem:[#allocation2] sm:$0x1] %vm302_vm5, %v2514_v17  ;;  %305 = vst.msk [vmem:[#allocation2 + $0x11] sm:$0x1] %vm302_vm5, %v2514_v17  ;;  %v2466_v22 = vld [vmem:[%s3076_s5 + $0x20] sm:$0xff]  }
   0xa   :  { %v60_v35 = vrot.slane %v59_v32, 4  ;;  %1236 = vst [vmem:[#allocation3] sm:$0x1] %v2514_v17  ;;  %1238 = vst [vmem:[#allocation3 + $0x11] sm:$0x1] %v2514_v17  ;;  %947 = vmatpush1.bf16.msra.mxu1 %v2462_v18  ;;  %v2470_v26 = vld [vmem:[%s3076_s5 + $0x40] sm:$0xff]  }
   0xb   :  { %v76_v36 = vadd.f32 %v75_v31, %v74_v33  ;;  %v2673_v62 = vsub.s32 %v178_v60, %v2670_v61  ;;  %948 = vmatprep.subr.bf16.mxu1 %v2514_v17  ;;  %v2471_v27 = vld [vmem:[%s3076_s5 + $0x48] sm:$0xff]   ;;  %v2472_v28 = vld [vmem:[%s3076_s5 + $0x50] sm:$0xff]   ;;  %v292_v30 = vsub.s32 1, %v2670_v61 }
   0xc   :  { %2416 = vmatpush3.bf16.msra.mxu0 %v2415_v25  ;;  %v61_v37 = vadd.f32 %v60_v35, %v59_v32  ;;  %v2469_v25 = vld [vmem:[%s3076_s5 + $0x38] sm:$0xff]   ;;  %s2515_s5 = smov 64  }
   0xd   :  { %2417 = vmatprep.subr.bf16.mxu0 %v2510_v0  ;;  %v77_v38 = vrot.slane %v76_v36, 4 }
   0xe   :  { %v62_v39 = vrot.slane %v61_v37, 2  ;;  %949 = vmatpush1.bf16.msra.mxu1 %v2463_v19 }
   0xf   :  { %v78_v40 = vadd.f32 %v77_v38, %v76_v36  ;;  %950 = vmatprep.subr.bf16.mxu1 %v2514_v17 }
  0x10   :  { %2419 = vmatpush3.bf16.msra.mxu0 %v2418_v34  ;;  %v63_v41 = vadd.f32 %v62_v39, %v61_v37 }
  0x11   :  { %2331 = vmatprep.subr.mxu0 %v2512_v4  ;;  %v79_v42 = vrot.slane %v78_v40, 2 }
  0x12   :  { %v64_v43 = vrot.slane %v63_v41, 1  ;;  %951 = vmatpush1.bf16.msra.mxu1 %v2464_v20 }
  0x13   :  { %v80_v44 = vadd.f32 %v79_v42, %v78_v40  ;;  %952 = vmatprep.subr.bf16.mxu1 %v2514_v17 }
  0x14   :  { %v65_v45 = vadd.f32 %v64_v43, %v63_v41 }
  0x15   :  { %v81_v46 = vrot.slane %v80_v44, 1 }
  0x16   :  { %953 = vmatpush1.bf16.msra.mxu1 %v2465_v21 }
  0x17   :  { %v82_v47 = vadd.f32 %v81_v46, %v80_v44  ;;  %954 = vmatprep.subr.bf16.mxu1 %v2514_v17 }
  0x19   :  { %v84_v48 = vsel %vm83_vm2, %v65_v45, %v82_v47 }
  0x1a   :  { %2329 = vmatmul.mubr.msk.f32.vlgmr.msra.gmra.mrb[0].mxu0 %vm52_vm1, %v84_v48  ;;  %955 = vmatpush1.bf16.msra.mxu1 %v2466_v22 }
  0x1b   :  { %2333 = vmatprep.mubr.msk.f32.mxu0 %vm2511_vm0, %v2512_v4  ;;  %2332 = vmatpush3.msk.msra.mxu0 %vm208_vm3, %v203_v49 }
  0x1c   :  { %2420 = vmatprep.subr.bf16.mxu0 %v2510_v0  ;;  %956 = vmatprep.subr.bf16.mxu1 %v2514_v17 }
  0x1e   :  { %957 = vmatpush1.bf16.msra.mxu1 %v2467_v23 }
  0x1f   :  { %958 = vmatprep.subr.bf16.mxu1 %v2514_v17 }
  0x22   :  { %959 = vmatpush1.bf16.msra.mxu1 %v2468_v24 }
  0x23   :  { %960 = vmatprep.subr.bf16.mxu1 %v2514_v17 }
  0x26   :  { %961 = vmatpush1.bf16.msra.mxu1 %v2469_v25 }
  0x27   :  { %962 = vmatprep.subr.bf16.mxu1 %v2514_v17 }
  0x2a   :  { %963 = vmatpush1.bf16.msra.mxu1 %v2470_v26 }
  0x2b   :  { %964 = vmatprep.subr.bf16.mxu1 %v2514_v17 }
  0x2e   :  { %965 = vmatpush1.bf16.msra.mxu1 %v2471_v27 }
  0x2f   :  { %966 = vmatprep.subr.bf16.mxu1 %v2514_v17 }
  0x32   :  { %967 = vmatpush1.bf16.msra.mxu1 %v2472_v28 }
  0x33   :  { %968 = vmatprep.subr.bf16.mxu1 %v2514_v17 }
  0x36   :  { %969 = vmatpush1.bf16.msra.mxu1 %v2473_v29 }
  0xed   :  { %v162_v50 = vpop.f32.mrb[0].mxu0 }
  0xee   :  { %v166_v51 = vmul.f32 0.001953125, %v162_v50  ;;  %v2330_v52 = vpop.f32.mrb[1].mxu0 }
  0xf0   :  { %v167_v53 = vmul.f32 %v166_v51, %v166_v51 }
  0xf2   :  { %v169_v54 = vrot.slane %v167_v53, 7 }
  0xf4   :  { %v171_v55 = vsub.f32 %v166_v51, %v169_v54 }
  0xf6   :  { %v173_v56 = vadd.f32 1e-05, %v171_v55 }
  0xf8   :  { %2502 = vrsqrt.f32 %v173_v56 }
 0x102   :  { %v2503_v63 = vpop.eup %2502 }
 0x103   :  { %v182_v1 = vrot.slane %v2503_v63, %v2673_v62 }
 0x105   :  { %v183_v2 = vcombine.high %v182_v1, %v182_v1 }
 0x107   :  { %v190_v5 = vrot.slane %v183_v2, %v2673_v62 }
 0x109   :  { %v192_v6 = vmul.f32 %v190_v5, %v172_v3 }
 0x10b   :  { %v194_v12 = vmul.f32 %v192_v6, %v166_v51 }
 0x10d   :  { %v195_v14 = vsub.f32 %v193_v8, %v194_v12 }
 0x10f   :  { %v200_v15 = vrot.slane %v195_v14, %v2684_v13 }
 0x111   :  { %v202_v16 = vsel %vm83_vm2, %v192_v6, %v200_v15 }
 0x112   :  { %2334 = vmatmul.mubr.msk.f32.vlgmr.msra.gmra.mrb[2].mxu0 %vm204_vm4, %v202_v16 }
 0x113   :  { %2368 = vmatprep.mubr.msk.f32.mxu0 %vm2511_vm0, %v2512_v4 }
 0x1e5   :  { %v278_v31 = vpop.f32.mrb[2].mxu0 }
 0x1e6   :  { %v285_v32 = vrot.slane %v278_v31, %v2684_v13  ;;  %v2335_v33 = vpop.f32.mrb[3].mxu0  ;;  %v293_v34 = vrot.slane %v278_v31, %v292_v30 }
 0x1e8   :  { %v286_v35 = vmul.f32 %v285_v32, %v2609_v7  ;;  %v287_v36 = vmul.f32 %v285_v32, %v2614_v9  ;;  %v288_v37 = vmul.f32 %v285_v32, %v2619_v10  ;;  %v289_v38 = vmul.f32 %v285_v32, %v2624_v11 }
 0x1ea   :  { %v294_v39 = vadd.f32 %v293_v34, %v286_v35  ;;  %v295_v40 = vadd.f32 %v293_v34, %v287_v36  ;;  %v296_v41 = vadd.f32 %v293_v34, %v288_v37  ;;  %v297_v42 = vadd.f32 %v293_v34, %v289_v38 }
 0x1ec   :  { %v298_v43 = vmax.f32 %v294_v39, 0.0  ;;  %v299_v44 = vmax.f32 %v295_v40, 0.0  ;;  %v300_v45 = vmax.f32 %v296_v41, 0.0  ;;  %v301_v46 = vmax.f32 %v297_v42, 0.0 }
 0x1ee   :  { %v306_v47 = vpack.c.bf16 %v299_v44, %v298_v43  ;;  %v307_v48 = vpack.c.bf16 %v301_v46, %v300_v45  ;;  %v2179_v49 = vpack.c.bf16 %v299_v44, %v299_v44  ;;  %v2180_v50 = vpack.c.bf16 %v301_v46, %v301_v46 }
 0x1f0   :  { %v317_v7 = vrot.slane %v306_v47, %v2673_v62  ;;  %v324_v9 = vrot.slane %v2179_v49, %v2673_v62  ;;  %v366_v10 = vrot.slane %v307_v48, %v2673_v62  ;;  %v373_v11 = vrot.slane %v2180_v50, %v2673_v62 }
 0x1f2   :  { %v325_v51 = vcombine.high %v317_v7, %v317_v7  ;;  %v326_v52 = vcombine.high %v324_v9, %v324_v9  ;;  %v333_v53 = vrot.slane %v317_v7, %v2673_v62  ;;  %v340_v54 = vrot.slane %v324_v9, %v2673_v62 }
 0x1f3   :  { %v374_v55 = vcombine.high %v366_v10, %v366_v10  ;;  %v375_v56 = vcombine.high %v373_v11, %v373_v11  ;;  %v382_v57 = vrot.slane %v366_v10, %v2673_v62  ;;  %v389_v58 = vrot.slane %v373_v11, %v2673_v62 }
 0x1f4   :  { %v347_v59 = vrot.slane %v325_v51, %v2673_v62  ;;  %v354_v60 = vrot.slane %v326_v52, %v2673_v62  ;;  %v355_v63 = vcombine.high %v333_v53, %v333_v53  ;;  %v356_v1 = vcombine.high %v340_v54, %v340_v54  ;;  %425 = vst.msk [vmem:[#allocation2 + $0x1] sm:$0x1] %vm302_vm5, %v333_v53 }
 0x1f5   :  { %429 = vst.msk [vmem:[#allocation2 + $0x5] sm:$0x1] %vm302_vm5, %v340_v54  ;;  %v396_v2 = vrot.slane %v374_v55, %v2673_v62  ;;  %v403_v3 = vrot.slane %v375_v56, %v2673_v62  ;;  %v404_v5 = vcombine.high %v382_v57, %v382_v57  ;;  %v405_v6 = vcombine.high %v389_v58, %v389_v58 }
 0x1f6   :  { %433 = vst.msk [vmem:[#allocation2 + $0x9] sm:$0x1] %vm302_vm5, %v382_v57  ;;  %437 = vst.msk [vmem:[#allocation2 + $0xd] sm:$0x1] %vm302_vm5, %v389_v58  ;;  %v357_v8 = vcombine.high %v347_v59, %v347_v59  ;;  %v358_v12 = vcombine.high %v354_v60, %v354_v60 }
 0x1f7   :  { %426 = vst.msk [vmem:[#allocation2 + $0x2] sm:$0x1] %vm302_vm5, %v347_v59  ;;  %427 = vst.msk [vmem:[#allocation2 + $0x3] sm:$0x1] %vm302_vm5, %v355_v63  ;;  %v406_v14 = vcombine.high %v396_v2, %v396_v2  ;;  %v407_v15 = vcombine.high %v403_v3, %v403_v3 }
 0x1f8   :  { %430 = vst.msk [vmem:[#allocation2 + $0x6] sm:$0x1] %vm302_vm5, %v354_v60  ;;  %431 = vst.msk [vmem:[#allocation2 + $0x7] sm:$0x1] %vm302_vm5, %v356_v1 }
 0x1f9   :  { %434 = vst.msk [vmem:[#allocation2 + $0xa] sm:$0x1] %vm302_vm5, %v396_v2  ;;  %435 = vst.msk [vmem:[#allocation2 + $0xb] sm:$0x1] %vm302_vm5, %v404_v5 }
 0x1fa   :  { %438 = vst.msk [vmem:[#allocation2 + $0xe] sm:$0x1] %vm302_vm5, %v403_v3  ;;  %439 = vst.msk [vmem:[#allocation2 + $0xf] sm:$0x1] %vm302_vm5, %v405_v6 }
 0x1fb   :  { %428 = vst.msk [vmem:[#allocation2 + $0x4] sm:$0x1] %vm302_vm5, %v357_v8  ;;  %432 = vst.msk [vmem:[#allocation2 + $0x8] sm:$0x1] %vm302_vm5, %v358_v12  ;;  %v457_v16 = vld [vmem:[#allocation2 + $0x1] sm:$0x1] }
 0x1fc   :  { %436 = vst.msk [vmem:[#allocation2 + $0xc] sm:$0x1] %vm302_vm5, %v406_v14  ;;  %440 = vst.msk [vmem:[#allocation2 + $0x10] sm:$0x1] %vm302_vm5, %v407_v15  ;;  %v477_v19 = vld [vmem:[#allocation2 + $0x5] sm:$0x1] }
 0x1fd   :  { %v481_v21 = vld [vmem:[#allocation2 + $0x9] sm:$0x1]  ;;  %v461_v26 = vld [vmem:[#allocation2 + $0x5] sm:$0x1]  ;;  %v469_v47 = vld [vmem:[#allocation2 + $0xd] sm:$0x1] }
 0x1fe   :  { %v474_v17 = vld [vmem:[#allocation2 + $0x2] sm:$0x1]  ;;  %v475_v18 = vld [vmem:[#allocation2 + $0x3] sm:$0x1]  ;;  %v465_v33 = vld [vmem:[#allocation2 + $0x9] sm:$0x1] }
 0x1ff   :  { %v478_v20 = vld [vmem:[#allocation2 + $0x6] sm:$0x1]  ;;  %v479_v22 = vld [vmem:[#allocation2 + $0x7] sm:$0x1]  ;;  %v738_v23 = vcombine.low %v474_v17, %v475_v18  ;;  %v458_v24 = vld [vmem:[#allocation2 + $0x2] sm:$0x1] }
 0x200   :  { %v459_v25 = vld [vmem:[#allocation2 + $0x3] sm:$0x1]  ;;  %v740_v29 = vcombine.low %v478_v20, %v479_v22  ;;  %v620_v32 = vcombine.low %v457_v16, %v458_v24  ;;  %v462_v37 = vld [vmem:[#allocation2 + $0x6] sm:$0x1]  ;;  %v463_v38 = vld [vmem:[#allocation2 + $0x7] sm:$0x1] }
 0x201   :  { %v748_v36 = vrot.slane %v738_v23, %v2673_v62  ;;  %v622_v42 = vcombine.low %v461_v26, %v462_v37  ;;  %v466_v45 = vld [vmem:[#allocation2 + $0xa] sm:$0x1]  ;;  %v467_v7 = vld [vmem:[#allocation2 + $0xb] sm:$0x1]  ;;  %v470_v9 = vld [vmem:[#allocation2 + $0xe] sm:$0x1] }
 0x202   :  { %v476_v27 = vld [vmem:[#allocation2 + $0x4] sm:$0x1]  ;;  %v480_v28 = vld [vmem:[#allocation2 + $0x8] sm:$0x1]  ;;  %v762_v41 = vrot.slane %v740_v29, %v2673_v62  ;;  %v630_v44 = vrot.slane %v620_v32, %v2673_v62  ;;  %v669_v11 = vcombine.low %v465_v33, %v466_v45  ;;  %v471_v53 = vld [vmem:[#allocation2 + $0xf] sm:$0x1]  ;;  %v671_v55 = vcombine.low %v469_v47, %v470_v9 }
 0x203   :  { %v460_v31 = vld [vmem:[#allocation2 + $0x4] sm:$0x1]  ;;  %v739_v34 = vcombine.low %v476_v27, %v477_v19  ;;  %v741_v35 = vcombine.low %v480_v28, %v481_v21  ;;  %v464_v39 = vld [vmem:[#allocation2 + $0x8] sm:$0x1]  ;;  %v468_v46 = vld [vmem:[#allocation2 + $0xc] sm:$0x1]  ;;  %v644_v51 = vrot.slane %v622_v42, %v2673_v62 }
 0x204   :  { %v621_v40 = vcombine.low %v459_v25, %v460_v31  ;;  %v623_v43 = vcombine.low %v463_v38, %v464_v39  ;;  %v472_v10 = vld [vmem:[#allocation2 + $0x10] sm:$0x1]  ;;  %v670_v54 = vcombine.low %v467_v7, %v468_v46  ;;  %v679_v63 = vrot.slane %v669_v11, %v2673_v62  ;;  %v1018_v20 = vld [vmem:[%s3077_s8] sm:$0xff]  ;;  %v1019_v21 = vld [vmem:[%s3077_s8 + $0x8] sm:$0xff] }
 0x205   :  { %v755_v48 = vrot.slane %v739_v34, %v2673_v62  ;;  %v769_v49 = vrot.slane %v741_v35, %v2673_v62  ;;  %v672_v59 = vcombine.low %v471_v53, %v472_v10  ;;  %v693_v2 = vrot.slane %v671_v55, %v2673_v62  ;;  %v445_v24 = vld [vmem:[#allocation2 + $0x4] sm:$0x1]  ;;  %v443_v25 = vld [vmem:[#allocation2 + $0x2] sm:$0x1]  ;;  %v444_v26 = vld [vmem:[#allocation2 + $0x3] sm:$0x1] }
 0x206   :  { %v637_v50 = vrot.slane %v621_v40, %v2673_v62  ;;  %v651_v52 = vrot.slane %v623_v43, %v2673_v62  ;;  %v686_v1 = vrot.slane %v670_v54, %v2673_v62  ;;  %v2421_v23 = vpack.c.bf16 %v1019_v21, %v1018_v20  ;;  %v441_v27 = vld [vmem:[#allocation2] sm:$0x1]  ;;  %v446_v28 = vld [vmem:[#allocation2 + $0x5] sm:$0x1]  ;;  %v447_v29 = vld [vmem:[#allocation2 + $0x6] sm:$0x1] }
 0x207   :  { %v770_v56 = vcombine.low %v748_v36, %v755_v48  ;;  %v771_v57 = vcombine.low %v762_v41, %v769_v49  ;;  %v700_v8 = vrot.slane %v672_v59, %v2673_v62  ;;  %v448_v31 = vld [vmem:[#allocation2 + $0x7] sm:$0x1]  ;;  %v508_v32 = vcombine.low %v445_v24, %v446_v28  ;;  %v484_v33 = vld [vmem:[#allocation2 + $0xc] sm:$0x1]  ;;  %v488_v34 = vld [vmem:[#allocation2 + $0x10] sm:$0x1] }
 0x208   :  { %v652_v58 = vcombine.low %v630_v44, %v637_v50  ;;  %v653_v60 = vcombine.low %v644_v51, %v651_v52  ;;  %v701_v14 = vcombine.low %v679_v63, %v686_v1  ;;  %2422 = vmatpush3.bf16.msra.mxu0 %v2421_v23  ;;  %v489_v35 = vld [vmem:[#allocation2 + $0x11] sm:$0x1]  ;;  %v442_v36 = vld [vmem:[#allocation2 + $0x1] sm:$0x1]  ;;  %v482_v37 = vld [vmem:[#allocation2 + $0xa] sm:$0x1]  ;;  %v507_v39 = vcombine.low %v443_v25, %v444_v26 }
 0x209   :  { %v778_v3 = vrot.slane %v770_v56, %v2673_v62  ;;  %v785_v5 = vrot.slane %v771_v57, %v2673_v62  ;;  %v702_v16 = vcombine.low %v693_v2, %v700_v8  ;;  %2423 = vmatprep.subr.bf16.mxu0 %v2510_v0  ;;  %v483_v38 = vld [vmem:[#allocation2 + $0xb] sm:$0x1]  ;;  %v509_v40 = vcombine.low %v447_v29, %v448_v31  ;;  %v485_v41 = vld [vmem:[#allocation2 + $0xd] sm:$0x1]  ;;  %v486_v42 = vld [vmem:[#allocation2 + $0xe] sm:$0x1] }
 0x20a   :  { %v660_v6 = vrot.slane %v652_v58, %v2673_v62  ;;  %v667_v12 = vrot.slane %v653_v60, %v2673_v62  ;;  %v709_v18 = vrot.slane %v701_v14, %v2673_v62  ;;  %v487_v43 = vld [vmem:[#allocation2 + $0xf] sm:$0x1]  ;;  %v788_v44 = vcombine.low %v484_v33, %v485_v41  ;;  %v449_v9 = vld [vmem:[#allocation2 + $0x8] sm:$0x1]  ;;  %v453_v10 = vld [vmem:[#allocation2 + $0xc] sm:$0x1] }
 0x20b   :  { %v786_v15 = vcombine.low %v778_v3, %v785_v5  ;;  %v716_v19 = vrot.slane %v702_v16, %v2673_v62  ;;  %v790_v45 = vcombine.low %v488_v34, %v489_v35  ;;  %v506_v46 = vcombine.low %v441_v27, %v442_v36  ;;  %v450_v52 = vld [vmem:[#allocation2 + $0x9] sm:$0x1]  ;;  %v451_v53 = vld [vmem:[#allocation2 + $0xa] sm:$0x1]  ;;  %v452_v54 = vld [vmem:[#allocation2 + $0xb] sm:$0x1] }
 0x20c   :  { %v668_v17 = vcombine.low %v660_v6, %v667_v12  ;;  %v530_v47 = vrot.slane %v508_v32, %v2673_v62  ;;  %v787_v48 = vcombine.low %v482_v37, %v483_v38  ;;  %v789_v49 = vcombine.low %v486_v42, %v487_v43  ;;  %v454_v57 = vld [vmem:[#allocation2 + $0xd] sm:$0x1]  ;;  %v455_v58 = vld [vmem:[#allocation2 + $0xe] sm:$0x1]  ;;  %v456_v59 = vld [vmem:[#allocation2 + $0xf] sm:$0x1] }
 0x20d   :  { %2193 = vmatprep.mubr.msk.bf16.mxu1 %vm52_vm1, %v786_v15  ;;  %v717_v22 = vcombine.low %v709_v18, %v716_v19  ;;  %v523_v50 = vrot.slane %v507_v39, %v2673_v62  ;;  %v537_v7 = vrot.slane %v509_v40, %v2673_v62  ;;  %v804_v11 = vrot.slane %v788_v44, %v2673_v62  ;;  %v1020_v34 = vld [vmem:[%s3077_s8 + $0x10] sm:$0xff]  ;;  %v1021_v35 = vld [vmem:[%s3077_s8 + $0x18] sm:$0xff]  ;;  %v1022_v37 = vld [vmem:[%s3077_s8 + $0x20] sm:$0xff] }
 0x20e   :  { %718 = vrot.lane.b32.xlu0 %v668_v17, %s2515_s5  ;;  %v818_v51 = vrot.slane %v790_v45, %v2673_v62  ;;  %v516_v55 = vrot.slane %v506_v46, %v2673_v62  ;;  %v797_v60 = vrot.slane %v787_v48, %v2673_v62  ;;  %v811_v63 = vrot.slane %v789_v49, %v2673_v62  ;;  %v1023_v38 = vld [vmem:[%s3077_s8 + $0x28] sm:$0xff]  ;;  %v1024_v40 = vld [vmem:[%s3077_s8 + $0x30] sm:$0xff]  ;;  %v1025_v41 = vld [vmem:[%s3077_s8 + $0x38] sm:$0xff] }
 0x20f   :  { %v539_v56 = vcombine.low %v530_v47, %v537_v7  ;;  %v555_v1 = vcombine.low %v449_v9, %v450_v52  ;;  %v557_v2 = vcombine.low %v453_v10, %v454_v57  ;;  %v556_v8 = vcombine.low %v451_v53, %v452_v54  ;;  %v1026_v43 = vld [vmem:[%s3077_s8 + $0x40] sm:$0xff]  ;;  %v1027_v44 = vld [vmem:[%s3077_s8 + $0x48] sm:$0xff]  ;;  %v1028_v45 = vld [vmem:[%s3077_s8 + $0x50] sm:$0xff] }
 0x210   :  { %v538_v3 = vcombine.low %v516_v55, %v523_v50  ;;  %v819_v5 = vcombine.low %v797_v60, %v804_v11  ;;  %v820_v6 = vcombine.low %v811_v63, %v818_v51  ;;  %v558_v12 = vcombine.low %v455_v58, %v456_v59  ;;  %v1029_v47 = vld [vmem:[%s3077_s8 + $0x58] sm:$0xff]  ;;  %v1030_v49 = vld [vmem:[%s3077_s8 + $0x60] sm:$0xff]  ;;  %v1031_v50 = vld [vmem:[%s3077_s8 + $0x68] sm:$0xff] }
 0x211   :  { %v553_v14 = vrot.slane %v539_v56, %v2673_v62  ;;  %v565_v15 = vrot.slane %v555_v1, %v2673_v62  ;;  %v579_v16 = vrot.slane %v557_v2, %v2673_v62  ;;  %v572_v20 = vrot.slane %v556_v8, %v2673_v62  ;;  %v1032_v9 = vld [vmem:[%s3077_s8 + $0x70] sm:$0xff]  ;;  %v1033_v10 = vld [vmem:[%s3077_s8 + $0x78] sm:$0xff] }
 0x212   :  { %720 = vrot.lane.b32.xlu0 %v717_v22, %s2515_s5  ;;  %v546_v17 = vrot.slane %v538_v3, %v2673_v62  ;;  %v827_v18 = vrot.slane %v819_v5, %v2673_v62  ;;  %v834_v19 = vrot.slane %v820_v6, %v2673_v62  ;;  %v586_v21 = vrot.slane %v558_v12, %v2673_v62 }
 0x213   :  { %v587_v23 = vcombine.low %v565_v15, %v572_v20  ;;  %v2424_v36 = vpack.c.bf16 %v1021_v35, %v1020_v34  ;;  %v2427_v39 = vpack.c.bf16 %v1023_v38, %v1022_v37  ;;  %v2430_v42 = vpack.c.bf16 %v1025_v41, %v1024_v40  ;;  %v1131_v40 = vld [vmem:[%s3080_s7] sm:$0x1] }
 0x214   :  { %v554_v22 = vcombine.low %v546_v17, %v553_v14  ;;  %v588_v24 = vcombine.low %v579_v16, %v586_v21  ;;  %v835_v27 = vcombine.low %v827_v18, %v834_v19  ;;  %v2433_v46 = vpack.c.bf16 %v1027_v44, %v1026_v43 }
 0x215   :  { %v595_v28 = vrot.slane %v587_v23, %v2673_v62  ;;  %2425 = vmatpush3.bf16.msra.mxu0 %v2424_v36  ;;  %v2436_v48 = vpack.c.bf16 %v1029_v47, %v1028_v45  ;;  %v2439_v7 = vpack.c.bf16 %v1031_v50, %v1030_v49  ;;  %v2442_v11 = vpack.c.bf16 %v1033_v10, %v1032_v9  ;;  %v2474_v45 = vld [vmem:[%s3081_s10 + $0x40] sm:$0xff]   ;;  %v2478_v49 = vld [vmem:[%s3081_s10 + $0x8] sm:$0xff]   ;;  %v2481_v9 = vld [vmem:[%s3081_s10 + $0x10] sm:$0xff]  }
 0x216   :  { %v602_v29 = vrot.slane %v588_v24, %v2673_v62  ;;  %2426 = vmatprep.subr.bf16.mxu0 %v2510_v0  ;;  %2268 = vmatprep.subr.bf16.mxu1 %v2474_v45  ;;  %v2476_v47 = vld [vmem:[%s3081_s10 + $0x80] sm:$0xff]   ;;  %v2479_v50 = vld [vmem:[%s3081_s10 + $0x88] sm:$0xff]   ;;  %v2482_v10 = vld [vmem:[%s3081_s10 + $0x90] sm:$0xff]  }
 0x218   :  { %v603_v32 = vcombine.low %v595_v28, %v602_v29 }
 0x219   :  { %2428 = vmatpush3.bf16.msra.mxu0 %v2427_v39 }
 0x21a   :  { %2429 = vmatprep.subr.bf16.mxu0 %v2510_v0 }
 0x21d   :  { %2431 = vmatpush3.bf16.msra.mxu0 %v2430_v42 }
 0x21e   :  { %2432 = vmatprep.subr.bf16.mxu0 %v2510_v0 }
 0x221   :  { %2434 = vmatpush3.bf16.msra.mxu0 %v2433_v46  ;;  %v2475_v46 = vld [vmem:[%s3081_s10] sm:$0xff]  }
 0x222   :  { %2435 = vmatprep.subr.bf16.mxu0 %v2510_v0 }
 0x225   :  { %2437 = vmatpush3.bf16.msra.mxu0 %v2436_v48  ;;  %v2477_v48 = vld [vmem:[%s3081_s10 + $0x48] sm:$0xff]  }
 0x226   :  { %2438 = vmatprep.subr.bf16.mxu0 %v2510_v0 }
 0x229   :  { %2440 = vmatpush3.bf16.msra.mxu0 %v2439_v7  ;;  %v2480_v7 = vld [vmem:[%s3081_s10 + $0x50] sm:$0xff]  }
 0x22a   :  { %2441 = vmatprep.subr.bf16.mxu0 %v2510_v0 }
 0x22d   :  { %2443 = vmatpush3.bf16.msra.mxu0 %v2442_v11  ;;  %v2483_v11 = vld [vmem:[%s3081_s10 + $0x58] sm:$0xff]  }
 0x22e   :  { %2371 = vmatprep.subr.mxu0 %v2512_v4 }
 0x280   :  { %v719_v25 = vpop.permute.xlu0 %718 }
 0x281   :  { %v838_v26 = vsel %vm52_vm1, %v554_v22, %v719_v25 }
 0x282   :  { %979 = vmatmul.mubr.bf16.vlgmr.msra.gmra.mrb[0].mxu1 %v838_v26  ;;  %v1141_v26 = vld [vmem:[%s3078_s9] sm:$0xff] }
 0x283   :  { %2194 = vmatprep.mubr.msk.bf16.mxu1 %vm52_vm1, %v835_v27  ;;  %2269 = vmatpush3.bf16.msra.mxu1 %v2475_v46 }
 0x284   :  { %v721_v31 = vpop.permute.xlu0 %720  ;;  %2270 = vmatprep.subr.bf16.mxu1 %v2477_v48 }
 0x285   :  { %v842_v33 = vsel %vm52_vm1, %v603_v32, %v721_v31 }
 0x287   :  { %2271 = vmatpush3.bf16.msra.mxu1 %v2478_v49 }
 0x288   :  { %2272 = vmatprep.subr.bf16.mxu1 %v2480_v7  ;;  %v1374_v7 = vld [vmem:[#allocation3] sm:$0x1] }
 0x28a   :  { %987 = vmatmul.mubr.bf16.gmra.mrb[4].mxu1 %v842_v33 }
 0x28b   :  { %2273 = vmatpush3.bf16.msra.mxu1 %v2481_v9 }
 0x28c   :  { %2274 = vmatprep.subr.bf16.mxu1 %v2483_v11 }
 0x355   :  { %v2860_v51 = vpop.f32.mrb[0].mxu1 }
 0x356   :  { %v982_v52 = vpop.f32.mrb[1].mxu1  ;;  %v1004_v54 = vmul.f32 %v2860_v51, %v2860_v51 }
 0x357   :  { %v2862_v53 = vpop.f32.mrb[2].mxu1  ;;  %v2484_v52 = vld [vmem:[%s3081_s10 + $0x18] sm:$0xff]  }
 0x358   :  { %v995_v55 = vadd.f32 %v2862_v53, %v2860_v51  ;;  %v1005_v56 = vmul.f32 %v2862_v53, %v2862_v53  ;;  %v985_v57 = vpop.f32.mrb[3].mxu1  ;;  %2275 = vmatpush3.bf16.msra.mxu1 %v2484_v52 }
 0x359   :  { %v2487_v57 = vld [vmem:[%s3081_s10 + $0x20] sm:$0xff]  }
 0x35a   :  { %v1008_v58 = vadd.f32 %v1005_v56, %v1004_v54  ;;  %v2485_v54 = vld [vmem:[%s3081_s10 + $0x98] sm:$0xff]   ;;  %v2488_v56 = vld [vmem:[%s3081_s10 + $0xa0] sm:$0xff]  }
 0x35d   :  { %v2870_v0 = vpop.f32.mrb[4].mxu1 }
 0x35e   :  { %v996_v59 = vadd.f32 %v995_v55, %v2870_v0  ;;  %v1006_v60 = vmul.f32 %v2870_v0, %v2870_v0  ;;  %v990_v63 = vpop.f32.mrb[5].mxu1  ;;  %v2486_v55 = vld [vmem:[%s3081_s10 + $0x60] sm:$0xff]  }
 0x35f   :  { %v2875_v1 = vpop.f32.mrb[6].mxu1  ;;  %2276 = vmatprep.subr.bf16.mxu1 %v2486_v55  ;;  %v2492_v63 = vld [vmem:[%s3081_s10 + $0x70] sm:$0xff]  }
 0x360   :  { %v1009_v2 = vadd.f32 %v1008_v58, %v1006_v60  ;;  %v997_v3 = vadd.f32 %v996_v59, %v2875_v1  ;;  %v1007_v5 = vmul.f32 %v2875_v1, %v2875_v1  ;;  %v993_v6 = vpop.f32.mrb[7].mxu1  ;;  %v2489_v58 = vld [vmem:[%s3081_s10 + $0x68] sm:$0xff]   ;;  %2277 = vmatpush3.bf16.msra.mxu1 %v2487_v57 }
 0x361   :  { %v2491_v59 = vld [vmem:[%s3081_s10 + $0xa8] sm:$0xff]   ;;  %2278 = vmatprep.subr.bf16.mxu1 %v2489_v58  ;;  %v2497_v6 = vld [vmem:[%s3081_s10 + $0xb8] sm:$0xff]  }
 0x362   :  { %v998_v8 = vrot.slane %v997_v3, 4  ;;  %v1010_v12 = vadd.f32 %v1009_v2, %v1007_v5  ;;  %v2490_v60 = vld [vmem:[%s3081_s10 + $0x28] sm:$0xff]   ;;  %v2494_v2 = vld [vmem:[%s3081_s10 + $0xb0] sm:$0xff]   ;;  %v2495_v5 = vld [vmem:[%s3081_s10 + $0x78] sm:$0xff]  }
 0x364   :  { %v999_v14 = vadd.f32 %v998_v8, %v997_v3  ;;  %v1011_v15 = vrot.slane %v1010_v12, 4  ;;  %2279 = vmatpush3.bf16.msra.mxu1 %v2490_v60  ;;  %v2493_v3 = vld [vmem:[%s3081_s10 + $0x30] sm:$0xff]   ;;  %v2496_v8 = vld [vmem:[%s3081_s10 + $0x38] sm:$0xff]  }
 0x365   :  { %2280 = vmatprep.subr.bf16.mxu1 %v2492_v63 }
 0x366   :  { %v1000_v16 = vrot.slane %v999_v14, 2  ;;  %v1012_v17 = vadd.f32 %v1011_v15, %v1010_v12  ;;  %v2971_v12 = vld [vmem:[%s3082_s12] sm:$0xff]  }
 0x368   :  { %v1001_v18 = vadd.f32 %v1000_v16, %v999_v14  ;;  %v1013_v19 = vrot.slane %v1012_v17, 2  ;;  %2281 = vmatpush3.bf16.msra.mxu1 %v2493_v3 }
 0x369   :  { %2282 = vmatprep.subr.bf16.mxu1 %v2495_v5 }
 0x36a   :  { %v1002_v20 = vrot.slane %v1001_v18, 1  ;;  %v1014_v21 = vadd.f32 %v1013_v19, %v1012_v17 }
 0x36c   :  { %v1015_v22 = vrot.slane %v1014_v21, 1  ;;  %v1003_v23 = vadd.f32 %v1002_v20, %v1001_v18  ;;  %2283 = vmatpush3.bf16.msra.mxu1 %v2496_v8 }
 0x36d   :  { %2396 = vmatprep.subr.bf16.mxu1 %v2971_v12 }
 0x36e   :  { %v1016_v24 = vadd.f32 %v1015_v22, %v1014_v21 }
 0x370   :  { %v1017_v25 = vsel %vm83_vm2, %v1003_v23, %v1016_v24 }
 0x371   :  { %2369 = vmatmul.mubr.f32.vlgmr.msra.gmra.mrb[4].mxu0 %v1017_v25 }
 0x372   :  { %2373 = vmatprep.mubr.msk.f32.mxu0 %vm2511_vm0, %v2512_v4  ;;  %2372 = vmatpush3.msra.mxu0 %v1141_v26  ;;  %v1110_v4 = vld [vmem:[%s3079_s6] sm:$0x1] }
 0x373   :  { %2376 = vmatprep.subr.bf16.mxu0 %v2476_v47 }
 0x444   :  { %v1100_v27 = vpop.f32.mrb[4].mxu0 }
 0x445   :  { %v1104_v28 = vmul.f32 0.001953125, %v1100_v27  ;;  %v2370_v29 = vpop.f32.mrb[5].mxu0 }
 0x447   :  { %v1105_v31 = vmul.f32 %v1104_v28, %v1104_v28 }
 0x449   :  { %v1107_v32 = vrot.slane %v1105_v31, 7 }
 0x44b   :  { %v1109_v33 = vsub.f32 %v1104_v28, %v1107_v32 }
 0x44d   :  { %v1111_v34 = vadd.f32 1e-05, %v1109_v33 }
 0x44f   :  { %2504 = vrsqrt.f32 %v1111_v34 }
 0x459   :  { %v2505_v35 = vpop.eup %2504 }
 0x45a   :  { %v1120_v36 = vrot.slane %v2505_v35, %v2673_v62 }
 0x45c   :  { %v1121_v37 = vcombine.high %v1120_v36, %v1120_v36 }
 0x45e   :  { %v1128_v38 = vrot.slane %v1121_v37, %v2673_v62 }
 0x460   :  { %v1130_v39 = vmul.f32 %v1128_v38, %v1110_v4 }
 0x462   :  { %v1132_v41 = vmul.f32 %v1130_v39, %v1104_v28 }
 0x464   :  { %v1133_v42 = vsub.f32 %v1131_v40, %v1132_v41 }
 0x466   :  { %v1138_v43 = vrot.slane %v1133_v42, %v2684_v13 }
 0x468   :  { %v1140_v44 = vsel %vm83_vm2, %v1130_v39, %v1138_v43 }
 0x469   :  { %2374 = vmatmul.mubr.msk.f32.vlgmr.msra.gmra.mrb[6].mxu0 %vm1142_vm6, %v1140_v44 }
 0x46a   :  { %2377 = vmatpush3.bf16.msra.mxu0 %v2476_v47 }
 0x46b   :  { %2378 = vmatprep.subr.bf16.mxu0 %v2479_v50 }
 0x46e   :  { %2379 = vmatpush3.bf16.msra.mxu0 %v2479_v50 }
 0x46f   :  { %2380 = vmatprep.subr.bf16.mxu0 %v2482_v10 }
 0x472   :  { %2381 = vmatpush3.bf16.msra.mxu0 %v2482_v10 }
 0x473   :  { %2382 = vmatprep.subr.bf16.mxu0 %v2485_v54 }
 0x476   :  { %2383 = vmatpush3.bf16.msra.mxu0 %v2485_v54 }
 0x477   :  { %2384 = vmatprep.subr.bf16.mxu0 %v2488_v56 }
 0x47a   :  { %2385 = vmatpush3.bf16.msra.mxu0 %v2488_v56 }
 0x47b   :  { %2386 = vmatprep.subr.bf16.mxu0 %v2491_v59 }
 0x47e   :  { %2387 = vmatpush3.bf16.msra.mxu0 %v2491_v59 }
 0x47f   :  { %2388 = vmatprep.subr.bf16.mxu0 %v2494_v2 }
 0x482   :  { %2389 = vmatpush3.bf16.msra.mxu0 %v2494_v2 }
 0x483   :  { %2390 = vmatprep.subr.bf16.mxu0 %v2497_v6 }
 0x486   :  { %2391 = vmatpush3.bf16.msra.mxu0 %v2497_v6 }
 0x53c   :  { %v1212_v14 = vpop.f32.mrb[6].mxu0 }
 0x53d   :  { %v1219_v15 = vrot.slane %v1212_v14, %v2684_v13  ;;  %v2375_v16 = vpop.f32.mrb[7].mxu0  ;;  %v1227_v17 = vrot.slane %v1212_v14, %v292_v30 }
 0x53f   :  { %v1220_v18 = vmul.f32 %v1219_v15, %v2860_v51  ;;  %v1221_v19 = vmul.f32 %v1219_v15, %v2862_v53  ;;  %v1222_v20 = vmul.f32 %v1219_v15, %v2870_v0  ;;  %v1223_v21 = vmul.f32 %v1219_v15, %v2875_v1 }
 0x541   :  { %v1228_v22 = vadd.f32 %v1227_v17, %v1220_v18  ;;  %v1229_v23 = vadd.f32 %v1227_v17, %v1221_v19  ;;  %v1230_v24 = vadd.f32 %v1227_v17, %v1222_v20  ;;  %v1231_v25 = vadd.f32 %v1227_v17, %v1223_v21 }
 0x543   :  { %v1232_v26 = vmax.f32 %v1228_v22, 0.0  ;;  %v1233_v27 = vmax.f32 %v1229_v23, 0.0  ;;  %v1234_v28 = vmax.f32 %v1230_v24, 0.0  ;;  %v1235_v13 = vmax.f32 %v1231_v25, 0.0 }
 0x545   :  { %v1239_v29 = vpack.c.bf16 %v1233_v27, %v1232_v26  ;;  %v1240_v31 = vpack.c.bf16 %v1235_v13, %v1234_v28  ;;  %v2196_v61 = vpack.c.bf16 %v1233_v27, %v1233_v27  ;;  %v2197_v30 = vpack.c.bf16 %v1235_v13, %v1235_v13 }
 0x547   :  { %v1250_v51 = vrot.slane %v1239_v29, %v2673_v62  ;;  %v1257_v53 = vrot.slane %v2196_v61, %v2673_v62  ;;  %v1299_v0 = vrot.slane %v1240_v31, %v2673_v62  ;;  %v1306_v1 = vrot.slane %v2197_v30, %v2673_v62 }
 0x549   :  { %v1258_v32 = vcombine.high %v1250_v51, %v1250_v51  ;;  %v1259_v33 = vcombine.high %v1257_v53, %v1257_v53  ;;  %v1266_v34 = vrot.slane %v1250_v51, %v2673_v62  ;;  %v1273_v35 = vrot.slane %v1257_v53, %v2673_v62  ;;  %2198 = vst.sshfl [vmem:[#allocation3 + $0x1] sm:$0x1 pattern:$0x73625140] %v1250_v51 }
 0x54a   :  { %2200 = vst.sshfl [vmem:[#allocation3 + $0x5] sm:$0x1 pattern:$0x73625140] %v1257_v53  ;;  %v1307_v36 = vcombine.high %v1299_v0, %v1299_v0  ;;  %v1308_v37 = vcombine.high %v1306_v1, %v1306_v1  ;;  %v1315_v4 = vrot.slane %v1299_v0, %v2673_v62  ;;  %v1322_v38 = vrot.slane %v1306_v1, %v2673_v62 }
 0x54b   :  { %2202 = vst.sshfl [vmem:[#allocation3 + $0x9] sm:$0x1 pattern:$0x73625140] %v1299_v0  ;;  %v1280_v39 = vrot.slane %v1258_v32, %v2673_v62  ;;  %v1287_v40 = vrot.slane %v1259_v33, %v2673_v62  ;;  %v1288_v41 = vcombine.high %v1266_v34, %v1266_v34  ;;  %v1289_v42 = vcombine.high %v1273_v35, %v1273_v35 }
 0x54c   :  { %2204 = vst.sshfl [vmem:[#allocation3 + $0xd] sm:$0x1 pattern:$0x73625140] %v1306_v1  ;;  %v1329_v43 = vrot.slane %v1307_v36, %v2673_v62  ;;  %v1336_v44 = vrot.slane %v1308_v37, %v2673_v62  ;;  %v1337_v45 = vcombine.high %v1315_v4, %v1315_v4  ;;  %v1338_v46 = vcombine.high %v1322_v38, %v1322_v38 }
 0x54d   :  { %2199 = vst.sshfl [vmem:[#allocation3 + $0x2] sm:$0x1 pattern:$0x73625140] %v1258_v32  ;;  %v1290_v47 = vcombine.high %v1280_v39, %v1280_v39  ;;  %v1291_v48 = vcombine.high %v1287_v40, %v1287_v40  ;;  %1360 = vst [vmem:[#allocation3 + $0x3] sm:$0x1] %v1288_v41 }
 0x54e   :  { %2201 = vst.sshfl [vmem:[#allocation3 + $0x6] sm:$0x1 pattern:$0x73625140] %v1259_v33  ;;  %1364 = vst [vmem:[#allocation3 + $0x7] sm:$0x1] %v1289_v42  ;;  %v1339_v49 = vcombine.high %v1329_v43, %v1329_v43  ;;  %v1340_v50 = vcombine.high %v1336_v44, %v1336_v44 }
 0x54f   :  { %2203 = vst.sshfl [vmem:[#allocation3 + $0xa] sm:$0x1 pattern:$0x73625140] %v1307_v36  ;;  %1368 = vst [vmem:[#allocation3 + $0xb] sm:$0x1] %v1337_v45 }
 0x550   :  { %2205 = vst.sshfl [vmem:[#allocation3 + $0xe] sm:$0x1 pattern:$0x73625140] %v1308_v37  ;;  %1372 = vst [vmem:[#allocation3 + $0xf] sm:$0x1] %v1338_v46 }
 0x551   :  { %1361 = vst [vmem:[#allocation3 + $0x4] sm:$0x1] %v1290_v47  ;;  %1365 = vst [vmem:[#allocation3 + $0x8] sm:$0x1] %v1291_v48  ;;  %v1390_v9 = vld [vmem:[#allocation3 + $0x1] sm:$0x1] }
 0x552   :  { %1369 = vst [vmem:[#allocation3 + $0xc] sm:$0x1] %v1339_v49  ;;  %1373 = vst [vmem:[#allocation3 + $0x10] sm:$0x1] %v1340_v50  ;;  %v1394_v10 = vld [vmem:[#allocation3 + $0x5] sm:$0x1] }
 0x553   :  { %v1375_v11 = vld [vmem:[#allocation3 + $0x1] sm:$0x1]  ;;  %v1410_v6 = vld [vmem:[#allocation3 + $0x5] sm:$0x1]  ;;  %v1414_v15 = vld [vmem:[#allocation3 + $0x9] sm:$0x1] }
 0x554   :  { %v1391_v52 = vld [vmem:[#allocation3 + $0x2] sm:$0x1]  ;;  %v1439_v56 = vcombine.low %v1374_v7, %v1375_v11  ;;  %v1392_v2 = vld [vmem:[#allocation3 + $0x3] sm:$0x1]  ;;  %v1379_v30 = vld [vmem:[#allocation3 + $0x5] sm:$0x1] }
 0x555   :  { %v1395_v54 = vld [vmem:[#allocation3 + $0x6] sm:$0x1]  ;;  %v1407_v55 = vld [vmem:[#allocation3 + $0x2] sm:$0x1]  ;;  %v1555_v57 = vcombine.low %v1390_v9, %v1391_v52  ;;  %v1396_v3 = vld [vmem:[#allocation3 + $0x7] sm:$0x1] }
 0x556   :  { %v1557_v58 = vcombine.low %v1394_v10, %v1395_v54  ;;  %v1411_v59 = vld [vmem:[#allocation3 + $0x6] sm:$0x1]  ;;  %v1376_v60 = vld [vmem:[#allocation3 + $0x2] sm:$0x1]  ;;  %v1408_v5 = vld [vmem:[#allocation3 + $0x3] sm:$0x1]  ;;  %v1449_v19 = vrot.slane %v1439_v56, %v2673_v62 }
 0x557   :  { %v1380_v63 = vld [vmem:[#allocation3 + $0x6] sm:$0x1]  ;;  %v1565_v8 = vrot.slane %v1555_v57, %v2673_v62  ;;  %v1412_v14 = vld [vmem:[#allocation3 + $0x7] sm:$0x1]  ;;  %v1671_v16 = vcombine.low %v1407_v55, %v1408_v5  ;;  %v1377_v17 = vld [vmem:[#allocation3 + $0x3] sm:$0x1] }
 0x558   :  { %v1381_v18 = vld [vmem:[#allocation3 + $0x7] sm:$0x1]  ;;  %v1393_v20 = vld [vmem:[#allocation3 + $0x4] sm:$0x1]  ;;  %v1397_v21 = vld [vmem:[#allocation3 + $0x8] sm:$0x1]  ;;  %v1579_v22 = vrot.slane %v1557_v58, %v2673_v62  ;;  %v1673_v24 = vcombine.low %v1411_v59, %v1412_v14  ;;  %v1440_v25 = vcombine.low %v1376_v60, %v1377_v17 }
 0x559   :  { %v1409_v23 = vld [vmem:[#allocation3 + $0x4] sm:$0x1]  ;;  %v1442_v26 = vcombine.low %v1380_v63, %v1381_v18  ;;  %v1556_v27 = vcombine.low %v1392_v2, %v1393_v20  ;;  %v1558_v28 = vcombine.low %v1396_v3, %v1397_v21  ;;  %v1413_v13 = vld [vmem:[#allocation3 + $0x8] sm:$0x1]  ;;  %v1681_v31 = vrot.slane %v1671_v16, %v2673_v62  ;;  %v1416_v32 = vld [vmem:[#allocation3 + $0xb] sm:$0x1] }
 0x55a   :  { %v1672_v29 = vcombine.low %v1409_v23, %v1410_v6  ;;  %v1378_v61 = vld [vmem:[#allocation3 + $0x4] sm:$0x1]  ;;  %v1674_v51 = vcombine.low %v1413_v13, %v1414_v15  ;;  %v1695_v53 = vrot.slane %v1673_v24, %v2673_v62  ;;  %v1456_v1 = vrot.slane %v1440_v25, %v2673_v62  ;;  %v1417_v33 = vld [vmem:[#allocation3 + $0xc] sm:$0x1]  ;;  %v1415_v4 = vld [vmem:[#allocation3 + $0xa] sm:$0x1] }
 0x55b   :  { %v1441_v0 = vcombine.low %v1378_v61, %v1379_v30  ;;  %v1572_v34 = vrot.slane %v1556_v27, %v2673_v62  ;;  %v1586_v35 = vrot.slane %v1558_v28, %v2673_v62  ;;  %v1470_v37 = vrot.slane %v1442_v26, %v2673_v62  ;;  %v1420_v38 = vld [vmem:[#allocation3 + $0xf] sm:$0x1]  ;;  %v1418_v42 = vld [vmem:[#allocation3 + $0xd] sm:$0x1]  ;;  %v1421_v43 = vld [vmem:[#allocation3 + $0x10] sm:$0x1] }
 0x55c   :  { %v1688_v36 = vrot.slane %v1672_v29, %v2673_v62  ;;  %v1702_v39 = vrot.slane %v1674_v51, %v2673_v62  ;;  %v1471_v41 = vcombine.low %v1449_v19, %v1456_v1  ;;  %v1422_v44 = vld [vmem:[#allocation3 + $0x11] sm:$0x1]  ;;  %v1720_v45 = vcombine.low %v1415_v4, %v1416_v32  ;;  %v1419_v49 = vld [vmem:[#allocation3 + $0xe] sm:$0x1]  ;;  %v1399_v52 = vld [vmem:[#allocation3 + $0xa] sm:$0x1] }
 0x55d   :  { %v1463_v40 = vrot.slane %v1441_v0, %v2673_v62  ;;  %v1587_v46 = vcombine.low %v1565_v8, %v1572_v34  ;;  %v1588_v47 = vcombine.low %v1579_v22, %v1586_v35  ;;  %v1721_v50 = vcombine.low %v1417_v33, %v1418_v42  ;;  %v1401_v58 = vld [vmem:[#allocation3 + $0xc] sm:$0x1]  ;;  %v1398_v3 = vld [vmem:[#allocation3 + $0x9] sm:$0x1]  ;;  %v1403_v5 = vld [vmem:[#allocation3 + $0xe] sm:$0x1] }
 0x55e   :  { %v1703_v48 = vcombine.low %v1681_v31, %v1688_v36  ;;  %v1704_v7 = vcombine.low %v1695_v53, %v1702_v39  ;;  %v1479_v10 = vrot.slane %v1471_v41, %v2673_v62  ;;  %v1722_v11 = vcombine.low %v1419_v49, %v1420_v38  ;;  %v1405_v6 = vld [vmem:[#allocation3 + $0x10] sm:$0x1]  ;;  %v1400_v16 = vld [vmem:[#allocation3 + $0xb] sm:$0x1]  ;;  %v2499_v18 = vld [vmem:[%s3082_s12 + $0x8] sm:$0xff]  }
 0x55f   :  { %v1472_v9 = vcombine.low %v1463_v40, %v1470_v37  ;;  %v1595_v54 = vrot.slane %v1587_v46, %v2673_v62  ;;  %v1602_v55 = vrot.slane %v1588_v47, %v2673_v62  ;;  %v1723_v57 = vcombine.low %v1421_v43, %v1422_v44  ;;  %v1382_v19 = vld [vmem:[#allocation3 + $0x8] sm:$0x1]  ;;  %v1402_v23 = vld [vmem:[#allocation3 + $0xd] sm:$0x1]  ;;  %v1404_v24 = vld [vmem:[#allocation3 + $0xf] sm:$0x1] }
 0x560   :  { %v1711_v56 = vrot.slane %v1703_v48, %v2673_v62  ;;  %v1718_v59 = vrot.slane %v1704_v7, %v2673_v62  ;;  %v1730_v63 = vrot.slane %v1720_v45, %v2673_v62  ;;  %v1737_v2 = vrot.slane %v1721_v50, %v2673_v62  ;;  %v1385_v26 = vld [vmem:[#allocation3 + $0xb] sm:$0x1]  ;;  %v1383_v31 = vld [vmem:[#allocation3 + $0x9] sm:$0x1]  ;;  %v1386_v61 = vld [vmem:[#allocation3 + $0xc] sm:$0x1] }
 0x561   :  { %v1486_v60 = vrot.slane %v1472_v9, %v2673_v62  ;;  %v1603_v8 = vcombine.low %v1595_v54, %v1602_v55  ;;  %v1744_v14 = vrot.slane %v1722_v11, %v2673_v62  ;;  %v1751_v15 = vrot.slane %v1723_v57, %v2673_v62  ;;  %v1389_v30 = vld [vmem:[#allocation3 + $0xf] sm:$0x1]  ;;  %v1384_v0 = vld [vmem:[#allocation3 + $0xa] sm:$0x1]  ;;  %v1387_v35 = vld [vmem:[#allocation3 + $0xd] sm:$0x1] }
 0x562   :  { %v1604_v17 = vcombine.low %v1398_v3, %v1399_v52  ;;  %v1719_v20 = vcombine.low %v1711_v56, %v1718_v59  ;;  %v1752_v22 = vcombine.low %v1730_v63, %v1737_v2  ;;  %v1605_v25 = vcombine.low %v1400_v16, %v1401_v58  ;;  %v1388_v36 = vld [vmem:[#allocation3 + $0xe] sm:$0x1]  ;;  %v2500_v38 = vld [vmem:[%s3082_s12 + $0x10] sm:$0xff]   ;;  %v2501_v50 = vld [vmem:[%s3082_s12 + $0x18] sm:$0xff]  }
 0x563   :  { %v1487_v21 = vcombine.low %v1479_v10, %v1486_v60  ;;  %2002 = vmatprep.mubr.bf16.mxu1 %v1603_v8  ;;  %v1753_v27 = vcombine.low %v1744_v14, %v1751_v15  ;;  %v1606_v28 = vcombine.low %v1402_v23, %v1403_v5  ;;  %v1607_v13 = vcombine.low %v1404_v24, %v1405_v6  ;;  %v2506_v11 = vld [vmem:[%s3072_s0] sm:$0xff]  ;;  %v2507_v52 = vld [vmem:[%s3072_s0 + $0x8] sm:$0xff]  ;;  %v2509_v56 = vld [vmem:[%s3072_s0 + $0x18] sm:$0xff] }
 0x564   :  { %v1614_v29 = vrot.slane %v1604_v17, %v2673_v62  ;;  %2392 = vmatprep.mubr.bf16.mxu0 %v1719_v20  ;;  %v1760_v51 = vrot.slane %v1752_v22, %v2673_v62  ;;  %v1621_v53 = vrot.slane %v1605_v25, %v2673_v62  ;;  %v1488_v1 = vcombine.low %v1382_v19, %v1383_v31  ;;  %v2206_v60 = vld [vmem:[%s3083_s11] ss:$0 sm:$0xff] }
 0x565   :  { %2003 = vmatmul.mubr.bf16.vlgmr.msra.gmra.mrb[8].mxu1 %v1487_v21  ;;  %v1767_v32 = vrot.slane %v1753_v27, %v2673_v62  ;;  %v1628_v33 = vrot.slane %v1606_v28, %v2673_v62  ;;  %v1635_v34 = vrot.slane %v1607_v13, %v2673_v62  ;;  %v1489_v37 = vcombine.low %v1384_v0, %v1385_v26  ;;  %v2231_v13 = vld [vmem:[%s3084_s13] ss:$0 sm:$0xff] }
 0x566   :  { %2397 = vmatpush3.bf16.msra.mxu1 %v2971_v12  ;;  %v1636_v4 = vcombine.low %v1614_v29, %v1621_v53  ;;  %v1490_v39 = vcombine.low %v1386_v61, %v1387_v35  ;;  %v1491_v40 = vcombine.low %v1388_v36, %v1389_v30  ;;  %v1498_v41 = vrot.slane %v1488_v1, %v2673_v62 }
 0x567   :  { %2398 = vmatprep.subr.bf16.mxu1 %v2499_v18  ;;  %v1768_v42 = vcombine.low %v1760_v51, %v1767_v32  ;;  %v1637_v43 = vcombine.low %v1628_v33, %v1635_v34  ;;  %v1505_v12 = vrot.slane %v1489_v37, %v2673_v62  ;;  %v2068_v54 = vpack.c.bf16 %v2507_v52, %v2506_v11 }
 0x568   :  { %v1644_v44 = vrot.slane %v1636_v4, %v2673_v62  ;;  %v1512_v45 = vrot.slane %v1490_v39, %v2673_v62  ;;  %v1519_v46 = vrot.slane %v1491_v40, %v2673_v62 }
 0x569   :  { %2393 = vmatmul.mubr.bf16.vlgmr.msra.gmra.mrb[8].mxu0 %v1768_v42  ;;  %v1651_v47 = vrot.slane %v1637_v43, %v2673_v62  ;;  %v1520_v48 = vcombine.low %v1498_v41, %v1505_v12 }
 0x56a   :  { %2399 = vmatpush3.bf16.msra.mxu1 %v2499_v18  ;;  %v1521_v49 = vcombine.low %v1512_v45, %v1519_v46 }
 0x56b   :  { %2400 = vmatprep.subr.bf16.mxu1 %v2500_v38  ;;  %v1652_v7 = vcombine.low %v1644_v44, %v1651_v47  ;;  %v1528_v9 = vrot.slane %v1520_v48, %v2673_v62 }
 0x56c   :  { %v1535_v10 = vrot.slane %v1521_v49, %v2673_v62  ;;  %v2508_v62 = vld [vmem:[%s3072_s0 + $0x10] sm:$0xff] }
 0x56d   :  { %2010 = vmatprep.mubr.bf16.mxu1 %v1652_v7  ;;  %v2069_v57 = vpack.c.bf16 %v2509_v56, %v2508_v62 }
 0x56e   :  { %2401 = vmatpush3.bf16.msra.mxu1 %v2500_v38  ;;  %v1536_v55 = vcombine.low %v1528_v9, %v1535_v10 }
 0x56f   :  { %2402 = vmatprep.subr.bf16.mxu1 %v2501_v50 }
 0x570   :  { %2011 = vmatmul.mubr.bf16.gmra.mrb[12].mxu1 %v1536_v55 }
 0x571   :  { %2404 = vmatprep.mubr.msk.bf16.mxu1 %vm52_vm1, %v2068_v54 }
 0x572   :  { %2403 = vmatpush3.bf16.msra.mxu1 %v2501_v50 }
 0x578   :  { %2405 = vmatmul.mubr.msk.bf16.vlgmr.msra.gmra.mrb[16].mxu1 %vm52_vm1, %v2069_v57 }
 0x638   :  { %v2284_v58 = vpop.f32.mrb[8].mxu1 }
 0x639   :  { %v2285_v59 = vpop.f32.mrb[9].mxu1 }
 0x63a   :  { %v2286_v63 = vadd.f32 %v2285_v59, %v2284_v58  ;;  %v2287_v2 = vpop.f32.mrb[10].mxu1 }
 0x63b   :  { %v2288_v3 = vpop.f32.mrb[11].mxu1 }
 0x63c   :  { %v2005_v5 = vadd.f32 %v2286_v63, %v2206_v60  ;;  %v2289_v6 = vadd.f32 %v2288_v3, %v2287_v2  ;;  %v2394_v8 = vpop.f32.mrb[8].mxu0 }
 0x63d   :  { %v2053_v14 = vpop.f32.mrb[9].mxu0 }
 0x63e   :  { %v2008_v15 = vadd.f32 %v2289_v6, %v2206_v60  ;;  %v2054_v16 = vadd.f32 %v2053_v14, %v2005_v5  ;;  %v2395_v17 = vpop.f32.mrb[10].mxu0 }
 0x63f   :  { %v2056_v18 = vpop.f32.mrb[11].mxu0 }
 0x640   :  { %v2057_v19 = vadd.f32 %v2056_v18, %v2008_v15 }
 0x642   :  { %v2454_v1 = vadd.f32 %v2231_v13, %v2057_v19 }
 0x643   :  { %v2290_v20 = vpop.f32.mrb[12].mxu1 }
 0x644   :  { %v2291_v21 = vpop.f32.mrb[13].mxu1 }
 0x645   :  { %v2292_v22 = vadd.f32 %v2291_v21, %v2290_v20  ;;  %v2293_v23 = vpop.f32.mrb[14].mxu1 }
 0x646   :  { %v2294_v24 = vpop.f32.mrb[15].mxu1 }
 0x647   :  { %v2013_v25 = vadd.f32 %v2292_v22, %v2206_v60  ;;  %v2295_v26 = vadd.f32 %v2294_v24, %v2293_v23 }
 0x649   :  { %v2016_v27 = vadd.f32 %v2295_v26, %v2206_v60  ;;  %v2062_v28 = vadd.f32 %v2394_v8, %v2013_v25 }
 0x64b   :  { %v2406_v29 = vpop.f32.mrb[16].mxu1  ;;  %v2065_v31 = vadd.f32 %v2395_v17, %v2016_v27 }
 0x64c   :  { %v2445_v61 = vadd.f32 %v2406_v29, %v2062_v28  ;;  %v2149_v30 = vpop.f32.mrb[17].mxu1 }
 0x64d   :  { %v2448_v51 = vadd.f32 %v2149_v30, %v2054_v16  ;;  %v2407_v53 = vpop.f32.mrb[18].mxu1  ;;  %v2451_v0 = vadd.f32 %v2231_v13, %v2065_v31 }
 0x64e   :  { %v2446_v32 = vadd.f32 %v2445_v61, %v2231_v13  ;;  %v2152_v33 = vpop.f32.mrb[19].mxu1 }
 0x64f   :  { %v2449_v34 = vadd.f32 %v2448_v51, %v2231_v13  ;;  %v2452_v35 = vadd.f32 %v2451_v0, %v2407_v53  ;;  %v2455_v36 = vadd.f32 %v2454_v1, %v2152_v33 }
 0x650   :  { %2170 = vst [vmem:[%s3085_s14 + $0x10] sm:$0xff] %v2446_v32 }
 0x651   :  { %2168 = vst [vmem:[%s3085_s14] sm:$0xff] %v2449_v34  ;;  %2171 = vst [vmem:[%s3085_s14 + $0x18] sm:$0xff] %v2452_v35 }
 0x652   :  { %2169 = vst [vmem:[%s3085_s14 + $0x8] sm:$0xff] %v2455_v36 }

</bundles_post_ra>
